<compile_context>
chip_gen: v6e
topology: v6e:2x2x1
jax: 0.10.0
libtpu: 0.0.40
codegen_flags: <defaults>
</compile_context>

<pallas_src>
import jax
import jax.numpy as jnp
from jax import lax
from jax.experimental import pallas as pl
from jax.experimental.pallas import tpu as pltpu

N = 64                  # keypoints per image
D = 32                  # descriptor dim
DK = D + 2              # fused feature dim: [descriptor (D) | normalized kpt (2)]
PAIRS_PER_STEP = 2      # lane-packs 2 pairs -> 2*N = 128-lane tiles & stores;
                        # keeps grid >= 2 for v7x megacore at small P.
MATCH_THRESHOLD = 0.0   # dual-softmax scores are strictly positive, so with the
                        # original 0.0 threshold `valid == mutual` (kept for
                        # semantic parity; raise to ~0.1-0.2 for real filtering).


def _matcher_kernel(feat_ref, w_ref, b_ref, matches_ref, mscores_ref):
    """Two image pairs per grid step, lane-packed to full 128-lane vregs.

    feat_ref    : (4N, D+2)  rows = [pairA img0 | pairA img1 | pairB img0 | pairB img1]
                             cols = [descriptor | normalized keypoint]
    w_ref       : (D+2, D)   fused projection weight [w ; wk]
    b_ref       : (1, D)     projection bias
    matches_ref : (1, 2N)    int32  (lanes [0,N) -> pairA, [N,2N) -> pairB)
    mscores_ref : (1, 2N)    float32, same layout
    """
    # ---- fused projection + positional encoding: ONE (4N,D+2)x(D+2,D) matmul ----
    proj = jnp.dot(feat_ref[...], w_ref[...],
                   preferred_element_type=jnp.float32) + b_ref[...]        # (4N, D)
    # L2 normalize each descriptor row.
    inv_norm = lax.rsqrt(jnp.sum(proj * proj, axis=1, keepdims=True) + 1e-12)
    proj = proj * inv_norm

    scale = 1.0 / (D ** 0.5)
    # Sublane slices at multiples of 8 are free; fold 1/sqrt(D) into the smaller
    # (N, D) image-0 operand instead of scaling the (N, 2N) similarity tile.
    p0a = proj[0 * N:1 * N, :] * scale
    p1a = proj[1 * N:2 * N, :]
    p0b = proj[2 * N:3 * N, :] * scale
    p1b = proj[3 * N:4 * N, :]

    # ---- transposed, lane-packed similarity: simT[j, i] ----
    # pairA occupies lanes [0, N), pairB lanes [N, 2N): everything below runs on
    # full 128-lane tiles, and per-image0-keypoint reductions stay on the cheap
    # sublane (axis=0) path with results landing lane-dense.
    dn = (((1,), (1,)), ((), ()))
    simT = jnp.concatenate(
        [lax.dot_general(p1a, p0a, dn, preferred_element_type=jnp.float32),
         lax.dot_general(p1b, p0b, dn, preferred_element_type=jnp.float32)],
        axis=1)                                                             # (N, 2N)

    # ---- dual softmax with one shared exp pass ----
    # softmax is shift-invariant and |simT| <= 1/sqrt(D) after L2-norm, so a
    # single global-max shift serves both directions: one EUP pass per tile.
    m = jnp.max(jnp.max(simT, axis=0, keepdims=True), axis=1, keepdims=True)
    e = jnp.exp(simT - m)                                                   # (N, 2N)

    right = lax.broadcasted_iota(jnp.int32, (N, 2 * N), 1) >= N             # pairB lanes
    # softmax over j: per-column sublane reduction (pair-correct as-is).
    denom_r = jnp.sum(e, axis=0, keepdims=True)                             # (1, 2N)
    # softmax over i: per-row, per-pair lane reduction via masked full-width sums.
    sum_l = jnp.sum(jnp.where(right, 0.0, e), axis=1, keepdims=True)        # (N, 1)
    sum_r = jnp.sum(jnp.where(right, e, 0.0), axis=1, keepdims=True)        # (N, 1)
    denom_c = jnp.where(right, sum_r, sum_l)                                # (N, 2N)

    scoresT = (e * pl.reciprocal(denom_r, approx=True)) * \
              (e * pl.reciprocal(denom_c, approx=True))                     # (N, 2N)

    # ---- mutual nearest neighbour (per-i work on the sublane axis) ----
    best_i = jnp.max(scoresT, axis=0, keepdims=True)                        # (1, 2N)
    best_l = jnp.max(jnp.where(right, -jnp.inf, scoresT), axis=1, keepdims=True)
    best_r = jnp.max(jnp.where(right, scoresT, -jnp.inf), axis=1, keepdims=True)
    best_j = jnp.where(right, best_r, best_l)                               # (N, 2N)

    i_is_max = scoresT >= best_i
    j_is_max = scoresT >= best_j
    iota_j = lax.broadcasted_iota(jnp.int32, (N, 2 * N), 0)                 # j index
    # first j achieving each column's max (torch argmax convention)
    idx = jnp.min(jnp.where(i_is_max, iota_j, N), axis=0, keepdims=True)    # (1, 2N)
    first_argmax = i_is_max & (iota_j == idx)
    mutual = jnp.max(jnp.where(first_argmax & j_is_max, 1, 0),
                     axis=0, keepdims=True) > 0                             # (1, 2N)

    valid = mutual & (best_i > MATCH_THRESHOLD)
    # Lane-dense, unmasked (1, 128) stores.
    matches_ref[...] = jnp.where(valid, idx, -1).astype(jnp.int32)
    mscores_ref[...] = jnp.where(valid, best_i, 0.0).astype(jnp.float32)


@jax.jit
def sp_pipeline(keypoints, descriptors, image_size, w, b, wk):
    """SP_Pipeline forward + representative downstream matcher.

    keypoints   : (P, 2, N, 2) pixel coordinates for P image pairs (or (2, N, 2))
    descriptors : (P, 2, N, D)                                      (or (2, N, D))
    image_size  : (2,) = [width, height]
    Returns (normalized_keypoints, matches, mscores).
    """
    single = keypoints.ndim == 3
    if single:
        keypoints = keypoints[None]
        descriptors = descriptors[None]
    P = keypoints.shape[0]

    # SP_Pipeline's own op: normalized = 2 * keypoints / size - 1.  Pure
    # elementwise; kept in XLA (a Pallas (*, 2) store would be lane-sparse).
    normalized = (2.0 * keypoints.astype(jnp.float32)
                  / image_size.astype(jnp.float32) - 1.0)                  # (P,2,N,2)

    # Fold the positional encoding into the MXU: features = [desc | kpts] along K,
    # weight = [w ; wk], so the kernel runs a single (4N, D+2) x (D+2, D) matmul.
    feats = jnp.concatenate(
        [descriptors.astype(jnp.float32), normalized], axis=-1)            # (P,2,N,DK)
    w_aug = jnp.concatenate([w, wk], axis=0).astype(jnp.float32)           # (DK, D)

    # Group PAIRS_PER_STEP pairs per grid step (amortizes the ~0.35 us per-step
    # overhead and lane-packs two (N,N) similarity tiles to full 128-lane vregs).
    Pp = ((P + PAIRS_PER_STEP - 1) // PAIRS_PER_STEP) * PAIRS_PER_STEP
    if Pp != P:
        feats = jnp.concatenate(
            [feats, jnp.zeros((Pp - P,) + feats.shape[1:], feats.dtype)], axis=0)
    G = Pp // PAIRS_PER_STEP
    feats = feats.reshape(G, PAIRS_PER_STEP * 2 * N, DK)                   # (G, 4N, DK)

    matches, mscores = pl.pallas_call(
        _matcher_kernel,
        out_shape=(
            jax.ShapeDtypeStruct((G, 1, PAIRS_PER_STEP * N), jnp.int32),
            jax.ShapeDtypeStruct((G, 1, PAIRS_PER_STEP * N), jnp.float32),
        ),
        grid=(G,),
        in_specs=[
            pl.BlockSpec((None, PAIRS_PER_STEP * 2 * N, DK), lambda g: (g, 0, 0)),
            pl.BlockSpec((DK, D), lambda g: (0, 0)),   # matcher weights stay VMEM-resident
            pl.BlockSpec((1, D), lambda g: (0, 0)),
        ],
        out_specs=(
            pl.BlockSpec((None, 1, PAIRS_PER_STEP * N), lambda g: (g, 0, 0)),
            pl.BlockSpec((None, 1, PAIRS_PER_STEP * N), lambda g: (g, 0, 0)),
        ),
        compiler_params=pltpu.CompilerParams(
            dimension_semantics=("parallel",)),
    )(feats, w_aug, b.astype(jnp.float32))

    matches = matches.reshape(Pp, N)[:P]     # (P, N)
    mscores = mscores.reshape(Pp, N)[:P]     # (P, N)
    if single:
        return normalized[0], matches[0], mscores[0]
    return normalized, matches, mscores


if __name__ == "__main__":
    key = jax.random.PRNGKey(0)
    k_kpts, k_desc, k_w, k_b, k_wk = jax.random.split(key, 5)

    P = 4                       # image pairs; grid = P // 2 = 2 ("parallel" axis)
    H, W = 480, 640
    image_size = jnp.array([W, H], dtype=jnp.float32)

    # synthetic extractor outputs: keypoints in pixel coords + descriptors
    keypoints = jax.random.uniform(
        k_kpts, (P, 2, N, 2), dtype=jnp.float32) * image_size
    descriptors = jax.random.normal(k_desc, (P, 2, N, D), dtype=jnp.float32)

    # deterministic synthetic matcher parameters
    w = jax.random.normal(k_w, (D, D), dtype=jnp.float32) * (1.0 / jnp.sqrt(D))
    b = jax.random.normal(k_b, (1, D), dtype=jnp.float32) * 0.01
    wk = jax.random.normal(k_wk, (2, D), dtype=jnp.float32) * 0.1

    nkpts, matches, mscores = sp_pipeline(
        keypoints, descriptors, image_size, w, b, wk)
    jax.block_until_ready((nkpts, matches, mscores))

    assert nkpts.shape == (P, 2, N, 2) and nkpts.dtype == jnp.float32
    assert matches.shape == (P, N) and matches.dtype == jnp.int32
    assert mscores.shape == (P, N) and mscores.dtype == jnp.float32
    print("KERNEL_OK")
</pallas_src>

<mosaic_0001>
module attributes {stable_mosaic.version = 11 : i64} {
  func.func @_matcher_kernel(%arg0: i32, %arg1: memref<1x256x34xf32, #tpu.memory_space<vmem>>, %arg2: memref<34x32xf32, #tpu.memory_space<vmem>>, %arg3: memref<1x32xf32, #tpu.memory_space<vmem>>, %arg4: memref<1x1x128xi32, #tpu.memory_space<vmem>>, %arg5: memref<1x1x128xf32, #tpu.memory_space<vmem>>) attributes {dimension_semantics = [#tpu.dimension_semantics<parallel>], iteration_bounds = array<i64: 2>, scalar_prefetch = 0 : i64, scratch_operands = 0 : i64, tpu.core_type = #tpu.core_type<tc>, window_params = [{transform_indices = @transform_0, window_bounds = array<i64: 1, 256, 34>}, {pipeline_mode = #tpu.pipeline_mode<synchronous>, transform_indices = @transform_1, window_bounds = array<i64: 34, 32>}, {pipeline_mode = #tpu.pipeline_mode<synchronous>, transform_indices = @transform_2, window_bounds = array<i64: 1, 32>}, {transform_indices = @transform_3, window_bounds = array<i64: 1, 1, 128>}, {transform_indices = @transform_4, window_bounds = array<i64: 1, 1, 128>}]} {
    %c0 = arith.constant 0 : index
    %c0_0 = arith.constant 0 : index
    %c0_1 = arith.constant 0 : index
    %0 = vector.load %arg1[%c0, %c0_0, %c0_1] : memref<1x256x34xf32, #tpu.memory_space<vmem>>, vector<1x256x34xf32>
    %1 = vector.shape_cast %0 : vector<1x256x34xf32> to vector<256x34xf32>
    %c0_2 = arith.constant 0 : index
    %c0_3 = arith.constant 0 : index
    %2 = vector.load %arg2[%c0_2, %c0_3] : memref<34x32xf32, #tpu.memory_space<vmem>>, vector<34x32xf32>
    %cst = arith.constant dense<0.000000e+00> : vector<256x32xf32>
    %3 = tpu.matmul %1, %2, %cst {dimension_numbers = #tpu.dot_dimension_numbers<[1], [0], [0], [1], [0, 0, 1, 1], [], []>} : vector<256x34xf32>, vector<34x32xf32>, vector<256x32xf32> -> vector<256x32xf32>
    %c0_4 = arith.constant 0 : index
    %c0_5 = arith.constant 0 : index
    %4 = vector.load %arg3[%c0_4, %c0_5] : memref<1x32xf32, #tpu.memory_space<vmem>>, vector<1x32xf32>
    %5 = vector.broadcast %4 : vector<1x32xf32> to vector<256x32xf32>
    %6 = arith.addf %3, %5 : vector<256x32xf32>
    %7 = arith.mulf %6, %6 : vector<256x32xf32>
    %cst_6 = arith.constant dense<0.000000e+00> : vector<256xf32>
    %8 = vector.multi_reduction <add>, %7, %cst_6 [1] : vector<256x32xf32> to vector<256xf32>
    %9 = vector.shape_cast %8 : vector<256xf32> to vector<256x1xf32>
    %cst_7 = arith.constant 9.99999996E-13 : f32
    %10 = vector.broadcast %cst_7 : f32 to vector<256x1xf32>
    %11 = arith.addf %9, %10 : vector<256x1xf32>
    %12 = math.rsqrt %11 : vector<256x1xf32>
    %13 = vector.broadcast %12 : vector<256x1xf32> to vector<256x32xf32>
    %14 = arith.mulf %6, %13 : vector<256x32xf32>
    %15 = vector.extract_strided_slice %14 {offsets = [0, 0], sizes = [64, 32], strides = [1, 1]} : vector<256x32xf32> to vector<64x32xf32>
    %cst_8 = arith.constant 0.176776692 : f32
    %16 = vector.broadcast %cst_8 : f32 to vector<64x32xf32>
    %17 = arith.mulf %15, %16 : vector<64x32xf32>
    %18 = vector.extract_strided_slice %14 {offsets = [64, 0], sizes = [64, 32], strides = [1, 1]} : vector<256x32xf32> to vector<64x32xf32>
    %19 = vector.extract_strided_slice %14 {offsets = [128, 0], sizes = [64, 32], strides = [1, 1]} : vector<256x32xf32> to vector<64x32xf32>
    %cst_9 = arith.constant 0.176776692 : f32
    %20 = vector.broadcast %cst_9 : f32 to vector<64x32xf32>
    %21 = arith.mulf %19, %20 : vector<64x32xf32>
    %22 = vector.extract_strided_slice %14 {offsets = [192, 0], sizes = [64, 32], strides = [1, 1]} : vector<256x32xf32> to vector<64x32xf32>
    %cst_10 = arith.constant dense<0.000000e+00> : vector<64x64xf32>
    %23 = tpu.matmul %18, %17, %cst_10 {dimension_numbers = #tpu.dot_dimension_numbers<[1], [1], [0], [0], [0, 0, 1, 0], [], []>} : vector<64x32xf32>, vector<64x32xf32>, vector<64x64xf32> -> vector<64x64xf32>
    %cst_11 = arith.constant dense<0.000000e+00> : vector<64x64xf32>
    %24 = tpu.matmul %22, %21, %cst_11 {dimension_numbers = #tpu.dot_dimension_numbers<[1], [1], [0], [0], [0, 0, 1, 0], [], []>} : vector<64x32xf32>, vector<64x32xf32>, vector<64x64xf32> -> vector<64x64xf32>
    %25 = tpu.concatenate %23, %24 in 1 : vector<64x64xf32>, vector<64x64xf32> -> vector<64x128xf32>
    %cst_12 = arith.constant dense<0xFF800000> : vector<128xf32>
    %26 = vector.multi_reduction <maximumf>, %25, %cst_12 [0] : vector<64x128xf32> to vector<128xf32>
    %27 = vector.shape_cast %26 : vector<128xf32> to vector<1x128xf32>
    %cst_13 = arith.constant dense<0xFF800000> : vector<1xf32>
    %28 = vector.multi_reduction <maximumf>, %27, %cst_13 [1] : vector<1x128xf32> to vector<1xf32>
    %29 = vector.shape_cast %28 : vector<1xf32> to vector<1x1xf32>
    %30 = vector.broadcast %29 : vector<1x1xf32> to vector<64x128xf32>
    %31 = arith.subf %25, %30 : vector<64x128xf32>
    %32 = math.exp %31 : vector<64x128xf32>
    %33 = tpu.iota {dimensions = array<i32: 1>} : vector<64x128xi32>
    %c64_i32 = arith.constant 64 : i32
    %34 = vector.broadcast %c64_i32 : i32 to vector<64x128xi32>
    %35 = arith.cmpi sge, %33, %34 : vector<64x128xi32>
    %cst_14 = arith.constant dense<0.000000e+00> : vector<128xf32>
    %36 = vector.multi_reduction <add>, %32, %cst_14 [0] : vector<64x128xf32> to vector<128xf32>
    %37 = vector.shape_cast %36 : vector<128xf32> to vector<1x128xf32>
    %cst_15 = arith.constant 0.000000e+00 : f32
    %38 = vector.broadcast %cst_15 : f32 to vector<64x128xf32>
    %39 = arith.select %35, %38, %32 : vector<64x128xi1>, vector<64x128xf32>
    %cst_16 = arith.constant dense<0.000000e+00> : vector<64xf32>
    %40 = vector.multi_reduction <add>, %39, %cst_16 [1] : vector<64x128xf32> to vector<64xf32>
    %41 = vector.shape_cast %40 : vector<64xf32> to vector<64x1xf32>
    %cst_17 = arith.constant 0.000000e+00 : f32
    %42 = vector.broadcast %cst_17 : f32 to vector<64x128xf32>
    %43 = arith.select %35, %32, %42 : vector<64x128xi1>, vector<64x128xf32>
    %cst_18 = arith.constant dense<0.000000e+00> : vector<64xf32>
    %44 = vector.multi_reduction <add>, %43, %cst_18 [1] : vector<64x128xf32> to vector<64xf32>
    %45 = vector.shape_cast %44 : vector<64xf32> to vector<64x1xf32>
    %46 = vector.shape_cast %45 : vector<64x1xf32> to vector<64x1xf32>
    %47 = vector.broadcast %46 : vector<64x1xf32> to vector<64x128xf32>
    %48 = vector.shape_cast %41 : vector<64x1xf32> to vector<64x1xf32>
    %49 = vector.broadcast %48 : vector<64x1xf32> to vector<64x128xf32>
    %50 = arith.select %35, %47, %49 : vector<64x128xi1>, vector<64x128xf32>
    %51 = tpu.reciprocal %37 {approx = true} : vector<1x128xf32> -> vector<1x128xf32>
    %52 = vector.broadcast %51 : vector<1x128xf32> to vector<64x128xf32>
    %53 = arith.mulf %32, %52 : vector<64x128xf32>
    %54 = tpu.reciprocal %50 {approx = true} : vector<64x128xf32> -> vector<64x128xf32>
    %55 = arith.mulf %32, %54 : vector<64x128xf32>
    %56 = arith.mulf %53, %55 : vector<64x128xf32>
    %cst_19 = arith.constant dense<0xFF800000> : vector<128xf32>
    %57 = vector.multi_reduction <maximumf>, %56, %cst_19 [0] : vector<64x128xf32> to vector<128xf32>
    %58 = vector.shape_cast %57 : vector<128xf32> to vector<1x128xf32>
    %cst_20 = arith.constant 0xFF800000 : f32
    %59 = vector.broadcast %cst_20 : f32 to vector<64x128xf32>
    %60 = arith.select %35, %59, %56 : vector<64x128xi1>, vector<64x128xf32>
    %cst_21 = arith.constant dense<0xFF800000> : vector<64xf32>
    %61 = vector.multi_reduction <maximumf>, %60, %cst_21 [1] : vector<64x128xf32> to vector<64xf32>
    %62 = vector.shape_cast %61 : vector<64xf32> to vector<64x1xf32>
    %cst_22 = arith.constant 0xFF800000 : f32
    %63 = vector.broadcast %cst_22 : f32 to vector<64x128xf32>
    %64 = arith.select %35, %56, %63 : vector<64x128xi1>, vector<64x128xf32>
    %cst_23 = arith.constant dense<0xFF800000> : vector<64xf32>
    %65 = vector.multi_reduction <maximumf>, %64, %cst_23 [1] : vector<64x128xf32> to vector<64xf32>
    %66 = vector.shape_cast %65 : vector<64xf32> to vector<64x1xf32>
    %67 = vector.shape_cast %66 : vector<64x1xf32> to vector<64x1xf32>
    %68 = vector.broadcast %67 : vector<64x1xf32> to vector<64x128xf32>
    %69 = vector.shape_cast %62 : vector<64x1xf32> to vector<64x1xf32>
    %70 = vector.broadcast %69 : vector<64x1xf32> to vector<64x128xf32>
    %71 = arith.select %35, %68, %70 : vector<64x128xi1>, vector<64x128xf32>
    %72 = vector.broadcast %58 : vector<1x128xf32> to vector<64x128xf32>
    %73 = arith.cmpf oge, %56, %72 : vector<64x128xf32>
    %74 = arith.cmpf oge, %56, %71 : vector<64x128xf32>
    %75 = tpu.iota {dimensions = array<i32: 0>} : vector<64x128xi32>
    %c64_i32_24 = arith.constant 64 : i32
    %76 = vector.broadcast %c64_i32_24 : i32 to vector<64x128xi32>
    %77 = arith.select %73, %75, %76 : vector<64x128xi1>, vector<64x128xi32>
    %cst_25 = arith.constant dense<2147483647> : vector<128xi32>
    %78 = vector.multi_reduction <minsi>, %77, %cst_25 [0] : vector<64x128xi32> to vector<128xi32>
    %79 = vector.shape_cast %78 : vector<128xi32> to vector<1x128xi32>
    %80 = vector.broadcast %79 : vector<1x128xi32> to vector<64x128xi32>
    %81 = arith.cmpi eq, %75, %80 : vector<64x128xi32>
    %82 = arith.andi %73, %81 : vector<64x128xi1>
    %83 = arith.andi %82, %74 : vector<64x128xi1>
    %c1_i32 = arith.constant 1 : i32
    %c0_i32 = arith.constant 0 : i32
    %84 = vector.broadcast %c1_i32 : i32 to vector<64x128xi32>
    %85 = vector.broadcast %c0_i32 : i32 to vector<64x128xi32>
    %86 = arith.select %83, %84, %85 : vector<64x128xi1>, vector<64x128xi32>
    %cst_26 = arith.constant dense<-2147483648> : vector<128xi32>
    %87 = vector.multi_reduction <maxsi>, %86, %cst_26 [0] : vector<64x128xi32> to vector<128xi32>
    %88 = vector.shape_cast %87 : vector<128xi32> to vector<1x128xi32>
    %c0_i32_27 = arith.constant 0 : i32
    %89 = vector.broadcast %c0_i32_27 : i32 to vector<1x128xi32>
    %90 = arith.cmpi sgt, %88, %89 : vector<1x128xi32>
    %cst_28 = arith.constant 0.000000e+00 : f32
    %91 = vector.broadcast %cst_28 : f32 to vector<1x128xf32>
    %92 = arith.cmpf ogt, %58, %91 : vector<1x128xf32>
    %93 = arith.andi %90, %92 : vector<1x128xi1>
    %c-1_i32 = arith.constant -1 : i32
    %94 = vector.broadcast %c-1_i32 : i32 to vector<1x128xi32>
    %95 = arith.select %93, %79, %94 : vector<1x128xi1>, vector<1x128xi32>
    %c0_29 = arith.constant 0 : index
    %c0_30 = arith.constant 0 : index
    %c0_31 = arith.constant 0 : index
    %96 = vector.load %arg4[%c0_29, %c0_30, %c0_31] : memref<1x1x128xi32, #tpu.memory_space<vmem>>, vector<1x1x128xi32>
    %97 = vector.shape_cast %96 : vector<1x1x128xi32> to vector<1x128xi32>
    %98 = vector.shape_cast %95 : vector<1x128xi32> to vector<1x1x128xi32>
    tpu.vector_store %arg4[%c0_29, %c0_30, %c0_31], %98 {strides = array<i32>} : memref<1x1x128xi32, #tpu.memory_space<vmem>>, vector<1x1x128xi32>,
    %cst_32 = arith.constant 0.000000e+00 : f32
    %99 = vector.broadcast %cst_32 : f32 to vector<1x128xf32>
    %100 = arith.select %93, %58, %99 : vector<1x128xi1>, vector<1x128xf32>
    %c0_33 = arith.constant 0 : index
    %c0_34 = arith.constant 0 : index
    %c0_35 = arith.constant 0 : index
    %101 = vector.load %arg5[%c0_33, %c0_34, %c0_35] : memref<1x1x128xf32, #tpu.memory_space<vmem>>, vector<1x1x128xf32>
    %102 = vector.shape_cast %101 : vector<1x1x128xf32> to vector<1x128xf32>
    %103 = vector.shape_cast %100 : vector<1x128xf32> to vector<1x1x128xf32>
    tpu.vector_store %arg5[%c0_33, %c0_34, %c0_35], %103 {strides = array<i32>} : memref<1x1x128xf32, #tpu.memory_space<vmem>>, vector<1x1x128xf32>,
    return
  }
  func.func @transform_0(%arg0: i32) -> (i32, i32, i32) {
    %c0_i32 = arith.constant 0 : i32
    %c0_i32_0 = arith.constant 0 : i32
    %c0_i32_1 = arith.constant 0 : i32
    return %arg0, %c0_i32, %c0_i32_0 : i32, i32, i32
  }
  func.func @transform_1(%arg0: i32) -> (i32, i32) {
    %c0_i32 = arith.constant 0 : i32
    %c0_i32_0 = arith.constant 0 : i32
    %c0_i32_1 = arith.constant 0 : i32
    return %c0_i32, %c0_i32_0 : i32, i32
  }
  func.func @transform_2(%arg0: i32) -> (i32, i32) {
    %c0_i32 = arith.constant 0 : i32
    %c0_i32_0 = arith.constant 0 : i32
    %c0_i32_1 = arith.constant 0 : i32
    return %c0_i32, %c0_i32_0 : i32, i32
  }
  func.func @transform_3(%arg0: i32) -> (i32, i32, i32) {
    %c0_i32 = arith.constant 0 : i32
    %c0_i32_0 = arith.constant 0 : i32
    %c0_i32_1 = arith.constant 0 : i32
    return %arg0, %c0_i32, %c0_i32_0 : i32, i32, i32
  }
  func.func @transform_4(%arg0: i32) -> (i32, i32, i32) {
    %c0_i32 = arith.constant 0 : i32
    %c0_i32_0 = arith.constant 0 : i32
    %c0_i32_1 = arith.constant 0 : i32
    return %arg0, %c0_i32, %c0_i32_0 : i32, i32, i32
  }
}

</mosaic_0001>

<bundles_post_ra>
// kernel: sp_pipeline.1
= control target key start
LH: loop header
LB: loop body
LE: loop exit
PB: predicated region body
PF: predicated region fallthrough
CT: control target
= control target key end

     0   :  { %s1966_s15 = smov 0   ;;  %s2711_s0 = inlined_call_operand.vmem [shape: f32[2,256,34], index: 0, kind: input, shape index: {}]   ;;  %s2712_s1 = inlined_call_operand.vmem [shape: f32[34,32], index: 1, kind: input, shape index: {}]   ;;  %s2713_s2 = inlined_call_operand.vmem [shape: f32[1,32], index: 2, kind: input, shape index: {}]   ;;  %s2714_s3 = inlined_call_operand.vmem [shape: s32[2,1,128], index: 3, kind: output, shape index: {0}]   ;;  %s2715_s4 = inlined_call_operand.vmem [shape: f32[2,1,128], index: 4, kind: output, shape index: {1}]  }
   0x1 LB: > { %s1564_s16 = sadd.s32 4294967295, %s1937_s15   ;;  %p1568_p0 = scmp.ge.s32.totalorder %s1937_s15, 1  ;;  %s1937_s15 = sphi %s1966_s15, %s15_s15  }
   0x2   : > { %p165_p1 = scmp.lt.s32.totalorder %s1937_s15, 3 }
   0x4   : > { %p166_p2 = pnand %p1568_p0, %p165_p1 }
   0x5   : > { %p192_p3 = scmp.lt.s32.totalorder (!%p166_p2), %s1564_s16, 1  ;;  %s1939_s7 = smov (!%p166_p2), 64  }
   0x6   : > { %169 = sbr.rel (%p166_p2) target bundleno = 1327 (0x52f), region = 32 }
   0xb   : > { %v239_v0 = vld [vmem:[%s2712_s1 + $0x20] sm:$0x3]  ;;  %vm344_vm0 = vcmask 1041408   ;;  %v238_v1 = vld [vmem:[%s2712_s1 + $0x18] sm:$0xff]  ;;  %v237_v2 = vld [vmem:[%s2712_s1 + $0x10] sm:$0xff]  ;;  %s2737_s16 = smov (!%p192_p3, %s1564_s16), 1 }
   0xc   : > { %1709 = vmatprep.subr.msk.mxu0 %vm344_vm0, %v239_v0  ;;  %v236_v3 = vld [vmem:[%s2712_s1 + $0x8] sm:$0xff]  ;;  %s1639_s25 = sshll.u32 %s2737_s16, 8  ;;  %vm247_vm1 = vcmask 277504   ;;  %v235_v4 = vld [vmem:[%s2712_s1] sm:$0xff]  ;;  %vm605_vm2 = vcmask 261120   ;;  %vm1152_vm3 = vcmask 523264   ;;  %s199_s10 = scalar_lea.vmem %s2714_s3, %s2737_s16 }
   0xd   : > { %1710 = vmatpush3.msk.msra.mxu0 %vm344_vm0, %v239_v0  ;;  %s1992_s28 = scalar_lea.vmem %s2711_s0, %s1639_s25  ;;  %v2064_v41 = vld [vmem:[%s2713_s2] ss:$0 sm:$0xff]  ;;  %s202_s13 = scalar_lea.vmem %s2715_s4, %s2737_s16 }
   0xe   : > { %1711 = vmatprep.subr.mxu0 %v238_v1  ;;  %v203_v5 = vld [vmem:[%s1992_s28] sm:$0xff]  ;;  %v204_v6 = vld [vmem:[%s1992_s28 + $0x8] sm:$0xff]  ;;  %v205_v7 = vld [vmem:[%s1992_s28 + $0x10] sm:$0xff] }
   0xf   : > { %1712 = vmatpush3.msra.mxu0 %v238_v1  ;;  %1719 = vmatprep.mubr.msk.f32.mxu0 %vm247_vm1, %v203_v5  ;;  %v206_v8 = vld [vmem:[%s1992_s28 + $0x18] sm:$0xff]  ;;  %v207_v9 = vld [vmem:[%s1992_s28 + $0x20] sm:$0xff]  ;;  %v208_v10 = vld [vmem:[%s1992_s28 + $0x28] sm:$0xff] }
  0x10   : > { %1713 = vmatprep.subr.mxu0 %v237_v2  ;;  %v209_v11 = vld [vmem:[%s1992_s28 + $0x30] sm:$0xff]  ;;  %v210_v12 = vld [vmem:[%s1992_s28 + $0x38] sm:$0xff]  ;;  %v211_v13 = vld [vmem:[%s1992_s28 + $0x40] sm:$0xff] }
  0x11   : > { %1714 = vmatpush3.msra.mxu0 %v237_v2  ;;  %v212_v14 = vld [vmem:[%s1992_s28 + $0x48] sm:$0xff]  ;;  %v213_v15 = vld [vmem:[%s1992_s28 + $0x50] sm:$0xff]  ;;  %v214_v16 = vld [vmem:[%s1992_s28 + $0x58] sm:$0xff] }
  0x12   : > { %1715 = vmatprep.subr.mxu0 %v236_v3  ;;  %v215_v17 = vld [vmem:[%s1992_s28 + $0x60] sm:$0xff]  ;;  %v216_v18 = vld [vmem:[%s1992_s28 + $0x68] sm:$0xff]  ;;  %v217_v19 = vld [vmem:[%s1992_s28 + $0x70] sm:$0xff] }
  0x13   : > { %1716 = vmatpush3.msra.mxu0 %v236_v3  ;;  %v218_v20 = vld [vmem:[%s1992_s28 + $0x78] sm:$0xff]  ;;  %v219_v21 = vld [vmem:[%s1992_s28 + $0x80] sm:$0xff]  ;;  %v220_v22 = vld [vmem:[%s1992_s28 + $0x88] sm:$0xff] }
  0x14   : > { %1717 = vmatprep.subr.mxu0 %v235_v4  ;;  %v221_v23 = vld [vmem:[%s1992_s28 + $0x90] sm:$0xff]  ;;  %v222_v24 = vld [vmem:[%s1992_s28 + $0x98] sm:$0xff]  ;;  %v223_v25 = vld [vmem:[%s1992_s28 + $0xa0] sm:$0xff] }
  0x15   : > { %1718 = vmatpush3.msra.mxu0 %v235_v4  ;;  %v224_v26 = vld [vmem:[%s1992_s28 + $0xa8] sm:$0xff]  ;;  %v225_v27 = vld [vmem:[%s1992_s28 + $0xb0] sm:$0xff]  ;;  %v226_v28 = vld [vmem:[%s1992_s28 + $0xb8] sm:$0xff] }
  0x16   : > { %1720 = vmatmul.mubr.msk.f32.vlgmr.msra.gmra.mxu0 %vm247_vm1, %v204_v6  ;;  %v227_v29 = vld [vmem:[%s1992_s28 + $0xc0] sm:$0xff]  ;;  %v228_v30 = vld [vmem:[%s1992_s28 + $0xc8] sm:$0xff]  ;;  %v229_v31 = vld [vmem:[%s1992_s28 + $0xd0] sm:$0xff] }
  0x17   : > { %1722 = vmatprep.mubr.msk.f32.mxu0 %vm247_vm1, %v205_v7  ;;  %v230_v32 = vld [vmem:[%s1992_s28 + $0xd8] sm:$0xff]  ;;  %v231_v33 = vld [vmem:[%s1992_s28 + $0xe0] sm:$0xff]  ;;  %v232_v34 = vld [vmem:[%s1992_s28 + $0xe8] sm:$0xff] }
  0x18   : > { %v233_v35 = vld [vmem:[%s1992_s28 + $0xf0] sm:$0xff]  ;;  %v234_v36 = vld [vmem:[%s1992_s28 + $0xf8] sm:$0xff] }
  0x1a   : > { %1723 = vmatmul.mubr.msk.f32.gmra.mxu0 %vm247_vm1, %v206_v8 }
  0x1b   : > { %1725 = vmatprep.mubr.msk.f32.mxu0 %vm247_vm1, %v207_v9 }
  0x1e   : > { %1726 = vmatmul.mubr.msk.f32.gmra.mxu0 %vm247_vm1, %v208_v10 }
  0x1f   : > { %1728 = vmatprep.mubr.msk.f32.mxu0 %vm247_vm1, %v209_v11 }
  0x22   : > { %1729 = vmatmul.mubr.msk.f32.gmra.mxu0 %vm247_vm1, %v210_v12 }
  0x23   : > { %1731 = vmatprep.mubr.msk.f32.mxu0 %vm247_vm1, %v211_v13 }
  0x26   : > { %1732 = vmatmul.mubr.msk.f32.gmra.mxu0 %vm247_vm1, %v212_v14 }
  0x27   : > { %1734 = vmatprep.mubr.msk.f32.mxu0 %vm247_vm1, %v213_v15 }
  0x2a   : > { %1735 = vmatmul.mubr.msk.f32.gmra.mxu0 %vm247_vm1, %v214_v16 }
  0x2b   : > { %1737 = vmatprep.mubr.msk.f32.mxu0 %vm247_vm1, %v215_v17 }
  0x2e   : > { %1738 = vmatmul.mubr.msk.f32.gmra.mxu0 %vm247_vm1, %v216_v18 }
  0x2f   : > { %1740 = vmatprep.mubr.msk.f32.mxu0 %vm247_vm1, %v217_v19 }
  0x32   : > { %1741 = vmatmul.mubr.msk.f32.gmra.mxu0 %vm247_vm1, %v218_v20 }
  0x33   : > { %1743 = vmatprep.mubr.msk.f32.mxu0 %vm247_vm1, %v219_v21 }
  0x36   : > { %1744 = vmatmul.mubr.msk.f32.gmra.mxu0 %vm247_vm1, %v220_v22 }
  0x37   : > { %1746 = vmatprep.mubr.msk.f32.mxu0 %vm247_vm1, %v221_v23 }
  0x3a   : > { %1747 = vmatmul.mubr.msk.f32.gmra.mxu0 %vm247_vm1, %v222_v24 }
  0x3b   : > { %1749 = vmatprep.mubr.msk.f32.mxu0 %vm247_vm1, %v223_v25 }
  0x3e   : > { %1750 = vmatmul.mubr.msk.f32.gmra.mxu0 %vm247_vm1, %v224_v26 }
  0x3f   : > { %1752 = vmatprep.mubr.msk.f32.mxu0 %vm247_vm1, %v225_v27 }
  0x42   : > { %1753 = vmatmul.mubr.msk.f32.gmra.mxu0 %vm247_vm1, %v226_v28 }
  0x43   : > { %1755 = vmatprep.mubr.msk.f32.mxu0 %vm247_vm1, %v227_v29 }
  0x46   : > { %1756 = vmatmul.mubr.msk.f32.gmra.mxu0 %vm247_vm1, %v228_v30 }
  0x47   : > { %1758 = vmatprep.mubr.msk.f32.mxu0 %vm247_vm1, %v229_v31 }
  0x4a   : > { %1759 = vmatmul.mubr.msk.f32.gmra.mxu0 %vm247_vm1, %v230_v32 }
  0x4b   : > { %1761 = vmatprep.mubr.msk.f32.mxu0 %vm247_vm1, %v231_v33 }
  0x4e   : > { %1762 = vmatmul.mubr.msk.f32.gmra.mxu0 %vm247_vm1, %v232_v34 }
  0x4f   : > { %1764 = vmatprep.mubr.msk.f32.mxu0 %vm247_vm1, %v233_v35 }
  0x52   : > { %1765 = vmatmul.mubr.msk.f32.gmra.mxu0 %vm247_vm1, %v234_v36 }
  0xd6   : > { %v1721_v37 = vpop.f32.mrf.mxu0 }
  0xd7   : > { %v2101_v63 = vadd.f32 %v1721_v37, %v2064_v41 }
  0xd8   : > { %v414_v38 = vpop.f32.mrf.mxu0 }
  0xd9   : > { %v2089_v55 = vadd.f32 %v2064_v41, %v414_v38  ;;  %v574_v10 = vmul.f32 %v2101_v63, %v2101_v63 }
  0xda   : > { %v1724_v39 = vpop.f32.mrf.mxu0 }
  0xdb   : > { %v2092_v56 = vadd.f32 %v1724_v39, %v2064_v41  ;;  %v573_v1 = vmul.f32 %v2089_v55, %v2089_v55  ;;  %v609_v14 = vsel %vm605_vm2, %v574_v10, 0.0 }
  0xdc   : > { %v424_v40 = vpop.f32.mrf.mxu0 }
  0xdd   : > { %v2075_v48 = vadd.f32 %v2064_v41, %v424_v40  ;;  %v576_v5 = vmul.f32 %v2092_v56, %v2092_v56  ;;  %v606_v9 = vsel %vm605_vm2, %v573_v1, 0.0 }
  0xde   : > { %v1727_v42 = vpop.f32.mrf.mxu0 }
  0xdf   : > { %v2067_v43 = vadd.f32 %v1727_v42, %v2064_v41  ;;  %v575_v61 = vmul.f32 %v2075_v48, %v2075_v48  ;;  %v615_v8 = vsel %vm605_vm2, %v576_v5, 0.0 }
  0xe0   : > { %v434_v44 = vpop.f32.mrf.mxu0 }
  0xe1   : > { %v2070_v45 = vadd.f32 %v2064_v41, %v434_v44  ;;  %v578_v46 = vmul.f32 %v2067_v43, %v2067_v43  ;;  %v612_v4 = vsel %vm605_vm2, %v575_v61, 0.0 }
  0xe2   : > { %v1730_v47 = vpop.f32.mrf.mxu0 }
  0xe3   : > { %v2078_v49 = vadd.f32 %v1730_v47, %v2064_v41  ;;  %v621_v50 = vsel %vm605_vm2, %v578_v46, 0.0  ;;  %v577_v51 = vmul.f32 %v2070_v45, %v2070_v45 }
  0xe4   : > { %622 = vadd.xlane.f32.xlu1 %v621_v50  ;;  %v444_v52 = vpop.f32.mrf.mxu0 }
  0xe5   : > { %v2084_v53 = vadd.f32 %v2064_v41, %v444_v52  ;;  %v580_v54 = vmul.f32 %v2078_v49, %v2078_v49  ;;  %v618_v59 = vsel %vm605_vm2, %v577_v51, 0.0 }
  0xe6   : > { %v1733_v57 = vpop.f32.mrf.mxu0 }
  0xe7   : > { %v627_v58 = vsel %vm605_vm2, %v580_v54, 0.0  ;;  %v579_v60 = vmul.f32 %v2084_v53, %v2084_v53  ;;  %v2123_v24 = vadd.f32 %v1733_v57, %v2064_v41 }
  0xe8   : > { %628 = vadd.xlane.f32.xlu0 %v627_v58  ;;  %v454_v62 = vpop.f32.mrf.mxu0  ;;  %619 = vadd.xlane.f32.xlu1 %v618_v59 }
  0xe9   : > { %v2106_v2 = vadd.f32 %v2064_v41, %v454_v62  ;;  %v624_v3 = vsel %vm605_vm2, %v579_v60, 0.0  ;;  %v582_v33 = vmul.f32 %v2123_v24, %v2123_v24 }
  0xea   : > { %v1736_v0 = vpop.f32.mrf.mxu0 }
  0xeb   : > { %v581_v11 = vmul.f32 %v2106_v2, %v2106_v2  ;;  %v633_v39 = vsel %vm605_vm2, %v582_v33, 0.0  ;;  %v2157_v42 = vadd.f32 %v1736_v0, %v2064_v41 }
  0xec   : > { %v464_v6 = vpop.f32.mrf.mxu0  ;;  %625 = vadd.xlane.f32.xlu0 %v624_v3  ;;  %613 = vadd.xlane.f32.xlu1 %v612_v4 }
  0xed   : > { %v630_v15 = vsel %vm605_vm2, %v581_v11, 0.0  ;;  %v2163_v50 = vadd.f32 %v2064_v41, %v464_v6  ;;  %v584_v58 = vmul.f32 %v2157_v42, %v2157_v42 }
  0xee   : > { %v2112_v7 = vpop.f32.mrf.mxu0 }
  0xef   : > { %v583_v62 = vmul.f32 %v2163_v50, %v2163_v50  ;;  %v639_v1 = vsel %vm605_vm2, %v584_v58, 0.0  ;;  %v2188_v5 = vadd.f32 %v2112_v7, %v2064_v41 }
  0xf0   : > { %v474_v12 = vpop.f32.mrf.mxu0  ;;  %616 = vadd.xlane.f32.xlu0 %v615_v8  ;;  %607 = vadd.xlane.f32.xlu1 %v606_v9 }
  0xf1   : > { %v2169_v54 = vadd.f32 %v2064_v41, %v474_v12  ;;  %v636_v6 = vsel %vm605_vm2, %v583_v62, 0.0 }
  0xf2   : > { %v1742_v13 = vpop.f32.mrf.mxu0 }
  0xf3   : > { %v585_v3 = vmul.f32 %v2169_v54, %v2169_v54  ;;  %v2194_v9 = vadd.f32 %v1742_v13, %v2064_v41 }
  0xf4   : > { %v484_v16 = vpop.f32.mrf.mxu0  ;;  %610 = vadd.xlane.f32.xlu0 %v609_v14  ;;  %631 = vadd.xlane.f32.xlu1 %v630_v15 }
  0xf5   : > { %v642_v10 = vsel %vm605_vm2, %v585_v3, 0.0  ;;  %v2200_v14 = vadd.f32 %v2064_v41, %v484_v16 }
  0xf6   : > { %v1745_v17 = vpop.f32.mrf.mxu0 }
  0xf7   : > { %v2175_v60 = vadd.f32 %v1745_v17, %v2064_v41  ;;  %v586_v17 = vmul.f32 %v2188_v5, %v2188_v5 }
  0xf8   : > { %v494_v18 = vpop.f32.mrf.mxu0 }
  0xf9   : > { %v2181_v0 = vadd.f32 %v2064_v41, %v494_v18  ;;  %v590_v8 = vmul.f32 %v2175_v60, %v2175_v60 }
  0xfa   : > { %v1748_v19 = vpop.f32.mrf.mxu0 }
  0xfb   : > { %v2151_v38 = vadd.f32 %v1748_v19, %v2064_v41  ;;  %v589_v11 = vmul.f32 %v2181_v0, %v2181_v0  ;;  %v657_v7 = vsel %vm605_vm2, %v590_v8, 0.0  ;;  %v588_v19 = vmul.f32 %v2194_v9, %v2194_v9 }
  0xfc   : > { %v504_v20 = vpop.f32.mrf.mxu0 }
  0xfd   : > { %v2145_v34 = vadd.f32 %v2064_v41, %v504_v20  ;;  %v592_v52 = vmul.f32 %v2151_v38, %v2151_v38  ;;  %v654_v13 = vsel %vm605_vm2, %v589_v11, 0.0  ;;  %v645_v20 = vsel %vm605_vm2, %v586_v17, 0.0 }
  0xfe   : > { %v1751_v21 = vpop.f32.mrf.mxu0 }
  0xff   : > { %v2137_v30 = vadd.f32 %v1751_v21, %v2064_v41  ;;  %v591_v46 = vmul.f32 %v2145_v34, %v2145_v34  ;;  %v663_v61 = vsel %vm605_vm2, %v592_v52, 0.0 }
 0x100   : > { %v514_v22 = vpop.f32.mrf.mxu0 }
 0x101   : > { %v2129_v27 = vadd.f32 %v2064_v41, %v514_v22  ;;  %v594_v40 = vmul.f32 %v2137_v30, %v2137_v30  ;;  %v660_v57 = vsel %vm605_vm2, %v591_v46, 0.0  ;;  %v587_v22 = vmul.f32 %v2200_v14, %v2200_v14 }
 0x102   : > { %v1754_v23 = vpop.f32.mrf.mxu0 }
 0x103   : > { %v2126_v25 = vadd.f32 %v1754_v23, %v2064_v41  ;;  %v593_v36 = vmul.f32 %v2129_v27, %v2129_v27  ;;  %v669_v51 = vsel %vm605_vm2, %v594_v40, 0.0  ;;  %v648_v33 = vsel %vm605_vm2, %v587_v22, 0.0 }
 0x104   : > { %v524_v26 = vpop.f32.mrf.mxu0 }
 0x105   : > { %v2132_v28 = vadd.f32 %v2064_v41, %v524_v26  ;;  %v596_v29 = vmul.f32 %v2126_v25, %v2126_v25  ;;  %v666_v44 = vsel %vm605_vm2, %v593_v36, 0.0  ;;  %v651_v26 = vsel %vm605_vm2, %v588_v19, 0.0 }
 0x106   : > { %v1757_v37 = vpop.f32.mrf.mxu0 }
 0x107   : > { %v675_v31 = vsel %vm605_vm2, %v596_v29, 0.0  ;;  %v595_v32 = vmul.f32 %v2132_v28, %v2132_v28  ;;  %v2204_v15 = vadd.f32 %v1757_v37, %v2064_v41 }
 0x108   : > { %676 = vadd.xlane.f32.xlu0 %v675_v31  ;;  %v534_v47 = vpop.f32.mrf.mxu0 }
 0x109   : > { %v672_v35 = vsel %vm605_vm2, %v595_v32, 0.0  ;;  %v2210_v18 = vadd.f32 %v2064_v41, %v534_v47  ;;  %v598_v23 = vmul.f32 %v2204_v15, %v2204_v15 }
 0x10a   : > { %673 = vadd.xlane.f32.xlu1 %v672_v35  ;;  %v1760_v59 = vpop.f32.mrf.mxu0 }
 0x10b   : > { %v2216_v21 = vadd.f32 %v1760_v59, %v2064_v41  ;;  %v597_v31 = vmul.f32 %v2210_v18, %v2210_v18  ;;  %v681_v35 = vsel %vm605_vm2, %v598_v23, 0.0 }
 0x10c   : > { %634 = vadd.xlane.f32.xlu0 %v633_v39  ;;  %v544_v4 = vpop.f32.mrf.mxu0 }
 0x10d   : > { %v2224_v29 = vadd.f32 %v2064_v41, %v544_v4  ;;  %v600_v37 = vmul.f32 %v2216_v21, %v2216_v21  ;;  %v678_v39 = vsel %vm605_vm2, %v597_v31, 0.0 }
 0x10e   : > { %667 = vadd.xlane.f32.xlu1 %v666_v44  ;;  %v1763_v12 = vpop.f32.mrf.mxu0 }
 0x10f   : > { %v2231_v36 = vadd.f32 %v1763_v12, %v2064_v41  ;;  %v599_v44 = vmul.f32 %v2224_v29, %v2224_v29  ;;  %v687_v47 = vsel %vm605_vm2, %v600_v37, 0.0 }
 0x110   : > { %670 = vadd.xlane.f32.xlu0 %v669_v51  ;;  %v554_v16 = vpop.f32.mrf.mxu0 }
 0x111   : > { %v2237_v40 = vadd.f32 %v2064_v41, %v554_v16  ;;  %v602_v52 = vmul.f32 %v2231_v36, %v2231_v36 }
 0x112   : > { %661 = vadd.xlane.f32.xlu1 %v660_v57  ;;  %v1766_v32 = vpop.f32.mrf.mxu0  ;;  %v684_v57 = vsel %vm605_vm2, %v599_v44, 0.0 }
 0x113   : > { %v2243_v51 = vadd.f32 %v1766_v32, %v2064_v41  ;;  %v601_v59 = vmul.f32 %v2237_v40, %v2237_v40 }
 0x114   : > { %664 = vadd.xlane.f32.xlu0 %v663_v61  ;;  %v564_v46 = vpop.f32.mrf.mxu0  ;;  %v693_v61 = vsel %vm605_vm2, %v602_v52, 0.0 }
 0x115   : > { %v2249_v58 = vadd.f32 %v2064_v41, %v564_v46  ;;  %v604_v62 = vmul.f32 %v2243_v51, %v2243_v51 }
 0x116   : > { %640 = vadd.xlane.f32.xlu1 %v639_v1  ;;  %v690_v1 = vsel %vm605_vm2, %v601_v59, 0.0 }
 0x117   : > { %v603_v3 = vmul.f32 %v2249_v58, %v2249_v58  ;;  %v699_v4 = vsel %vm605_vm2, %v604_v62, 0.0 }
 0x118   : > { %637 = vadd.xlane.f32.xlu0 %v636_v6 }
 0x119   : > { %v696_v41 = vsel %vm605_vm2, %v603_v3, 0.0 }
 0x11a   : > { %643 = vadd.xlane.f32.xlu1 %v642_v10 }
 0x11c   : > { %658 = vadd.xlane.f32.xlu0 %v657_v7 }
 0x11e   : > { %655 = vadd.xlane.f32.xlu1 %v654_v13 }
 0x120   : > { %646 = vadd.xlane.f32.xlu0 %v645_v20 }
 0x122   : > { %652 = vadd.xlane.f32.xlu1 %v651_v26 }
 0x124   : > { %649 = vadd.xlane.f32.xlu0 %v648_v33 }
 0x126   : > { %682 = vadd.xlane.f32.xlu1 %v681_v35 }
 0x128   : > { %679 = vadd.xlane.f32.xlu0 %v678_v39 }
 0x12a   : > { %688 = vadd.xlane.f32.xlu1 %v687_v47 }
 0x12c   : > { %685 = vadd.xlane.f32.xlu0 %v684_v57 }
 0x12e   : > { %694 = vadd.xlane.f32.xlu1 %v693_v61 }
 0x130   : > { %691 = vadd.xlane.f32.xlu0 %v690_v1 }
 0x132   : > { %700 = vadd.xlane.f32.xlu1 %v699_v4 }
 0x134   : > { %697 = vadd.xlane.f32.xlu0 %v696_v41 }
 0x16d   : > { %v623_v6 = vpop.xlane.xlu1 %622 }
 0x16e   : > { %v707_v11 = vadd.f32 1e-12, %v623_v6 }
 0x171   : > { %v629_v8 = vpop.xlane.xlu0 %628  ;;  %v620_v10 = vpop.xlane.xlu1 %619 }
 0x172   : > { %v709_v12 = vadd.f32 1e-12, %v629_v8  ;;  %v706_v13 = vadd.f32 1e-12, %v620_v10 }
 0x174   : > { %1833 = vrsqrt.f32 %v709_v12 }
 0x175   : > { %v626_v7 = vpop.xlane.xlu0 %625  ;;  %v614_v17 = vpop.xlane.xlu1 %613  ;;  %1835 = vrsqrt.f32 %v707_v11 }
 0x176   : > { %v708_v19 = vadd.f32 1e-12, %v626_v7  ;;  %v704_v26 = vadd.f32 1e-12, %v614_v17 }
 0x178   : > { %1837 = vrsqrt.f32 %v708_v19 }
 0x179   : > { %v617_v16 = vpop.xlane.xlu0 %616  ;;  %v608_v20 = vpop.xlane.xlu1 %607  ;;  %1839 = vrsqrt.f32 %v706_v13 }
 0x17a   : > { %v705_v22 = vadd.f32 1e-12, %v617_v16  ;;  %v702_v47 = vadd.f32 1e-12, %v608_v20 }
 0x17c   : > { %1841 = vrsqrt.f32 %v705_v22 }
 0x17d   : > { %v632_v23 = vpop.xlane.xlu1 %631  ;;  %v611_v32 = vpop.xlane.xlu0 %610 }
 0x17e   : > { %v710_v31 = vadd.f32 1e-12, %v632_v23  ;;  %v703_v35 = vadd.f32 1e-12, %v611_v32 }
 0x180   : > { %1843 = vrsqrt.f32 %v710_v31 }
 0x181   : > { %v1834_v33 = vpop.eup %1833  ;;  %1845 = vrsqrt.f32 %v704_v26 }
 0x182   : > { %v773_v37 = vmul.f32 %v1834_v33, %v2078_v49  ;;  %v1836_v39 = vpop.eup %1835  ;;  %1847 = vrsqrt.f32 %v703_v35 }
 0x183   : > { %v771_v57 = vmul.f32 %v1836_v39, %v2067_v43  ;;  %1849 = vrsqrt.f32 %v702_v47 }
 0x184   : > { %v805_v44 = vmul.f32 0.17677669, %v773_v37 }
 0x185   : > { %v1838_v46 = vpop.eup %1837  ;;  %v803_v62 = vmul.f32 0.17677669, %v771_v57 }
 0x186   : > { %1767 = vmatprep.subr.msk.mxu1 %vm605_vm2, %v805_v44  ;;  %v772_v52 = vmul.f32 %v1838_v46, %v2084_v53  ;;  %v1840_v59 = vpop.eup %1839 }
 0x187   : > { %1768 = vmatpush3.xpose.msk.msra.mxu1 %vm605_vm2, %v805_v44  ;;  %v770_v49 = vmul.f32 %v1840_v59, %v2070_v45 }
 0x188   : > { %v804_v61 = vmul.f32 0.17677669, %v772_v52 }
 0x189   : > { %v1842_v1 = vpop.eup %1841  ;;  %v802_v4 = vmul.f32 0.17677669, %v770_v49 }
 0x18a   : > { %1769 = vmatprep.subr.msk.mxu1 %vm605_vm2, %v804_v61  ;;  %v769_v53 = vmul.f32 %v1842_v1, %v2092_v56 }
 0x18b   : > { %1770 = vmatpush3.xpose.msk.msra.mxu1 %vm605_vm2, %v804_v61 }
 0x18c   : > { %1771 = vmatprep.subr.msk.mxu1 %vm605_vm2, %v803_v62  ;;  %v801_v8 = vmul.f32 0.17677669, %v769_v53 }
 0x18d   : > { %v1844_v3 = vpop.eup %1843 }
 0x18e   : > { %v1846_v43 = vpop.eup %1845  ;;  %v774_v41 = vmul.f32 %v1844_v3, %v2106_v2 }
 0x18f   : > { %1772 = vmatpush3.xpose.msk.msra.mxu1 %vm605_vm2, %v803_v62  ;;  %v768_v10 = vmul.f32 %v1846_v43, %v2075_v48  ;;  %v1848_v11 = vpop.eup %1847 }
 0x190   : > { %1773 = vmatprep.subr.msk.mxu1 %vm605_vm2, %v802_v4  ;;  %1783 = vmatprep.mubr.msk.f32.mxu1 %vm605_vm2, %v774_v41  ;;  %v767_v13 = vmul.f32 %v1848_v11, %v2101_v63  ;;  %v1850_v19 = vpop.eup %1849 }
 0x191   : > { %v677_v6 = vpop.xlane.xlu0 %676  ;;  %v800_v17 = vmul.f32 0.17677669, %v768_v10  ;;  %v766_v26 = vmul.f32 %v1850_v19, %v2089_v55 }
 0x192   : > { %v725_v45 = vadd.f32 1e-12, %v677_v6  ;;  %v799_v23 = vmul.f32 0.17677669, %v767_v13 }
 0x193   : > { %1774 = vmatpush3.xpose.msk.msra.mxu1 %vm605_vm2, %v802_v4  ;;  %v674_v12 = vpop.xlane.xlu1 %673  ;;  %v798_v35 = vmul.f32 0.17677669, %v766_v26 }
 0x194   : > { %1851 = vrsqrt.f32 %v725_v45  ;;  %v724_v56 = vadd.f32 1e-12, %v674_v12  ;;  %1775 = vmatprep.subr.msk.mxu1 %vm605_vm2, %v801_v8 }
 0x195   : > { %v635_v7 = vpop.xlane.xlu0 %634 }
 0x196   : > { %1853 = vrsqrt.f32 %v724_v56  ;;  %v711_v2 = vadd.f32 1e-12, %v635_v7 }
 0x197   : > { %1776 = vmatpush3.xpose.msk.msra.mxu1 %vm605_vm2, %v801_v8  ;;  %v668_v16 = vpop.xlane.xlu1 %667 }
 0x198   : > { %1855 = vrsqrt.f32 %v711_v2  ;;  %v722_v48 = vadd.f32 1e-12, %v668_v16  ;;  %1777 = vmatprep.subr.msk.mxu1 %vm605_vm2, %v800_v17 }
 0x199   : > { %v671_v20 = vpop.xlane.xlu0 %670 }
 0x19a   : > { %v723_v22 = vadd.f32 1e-12, %v671_v20  ;;  %1857 = vrsqrt.f32 %v722_v48 }
 0x19b   : > { %1778 = vmatpush3.xpose.msk.msra.mxu1 %vm605_vm2, %v800_v17  ;;  %v662_v31 = vpop.xlane.xlu1 %661 }
 0x19c   : > { %1859 = vrsqrt.f32 %v723_v22  ;;  %1779 = vmatprep.subr.msk.mxu1 %vm605_vm2, %v799_v23  ;;  %v720_v32 = vadd.f32 1e-12, %v662_v31 }
 0x19d   : > { %v665_v63 = vpop.xlane.xlu0 %664 }
 0x19e   : > { %v721_v33 = vadd.f32 1e-12, %v665_v63 }
 0x19f   : > { %1780 = vmatpush3.xpose.msk.msra.mxu1 %vm605_vm2, %v799_v23  ;;  %v641_v37 = vpop.xlane.xlu1 %640 }
 0x1a0   : > { %1861 = vrsqrt.f32 %v721_v33  ;;  %v713_v39 = vadd.f32 1e-12, %v641_v37  ;;  %1781 = vmatprep.subr.msk.mxu1 %vm605_vm2, %v798_v35 }
 0x1a1   : > { %v1852_v44 = vpop.eup %1851  ;;  %v638_v55 = vpop.xlane.xlu0 %637  ;;  %1863 = vrsqrt.f32 %v720_v32 }
 0x1a2   : > { %v712_v46 = vadd.f32 1e-12, %v638_v55  ;;  %v789_v47 = vmul.f32 %v1852_v44, %v2126_v25  ;;  %1865 = vrsqrt.f32 %v713_v39 }
 0x1a3   : > { %v1854_v52 = vpop.eup %1853  ;;  %1782 = vmatpush3.xpose.msk.msra.mxu1 %vm605_vm2, %v798_v35  ;;  %v644_v57 = vpop.xlane.xlu1 %643 }
 0x1a4   : > { %1867 = vrsqrt.f32 %v712_v46  ;;  %v714_v59 = vadd.f32 1e-12, %v644_v57  ;;  %v813_v61 = vmul.f32 0.17677669, %v789_v47  ;;  %v788_v62 = vmul.f32 %v1854_v52, %v2132_v28 }
 0x1a5   : > { %v1856_v49 = vpop.eup %1855  ;;  %v659_v1 = vpop.xlane.xlu0 %658 }
 0x1a6   : > { %1869 = vrsqrt.f32 %v714_v59  ;;  %v719_v3 = vadd.f32 1e-12, %v659_v1  ;;  %1795 = vmatprep.subr.msk.mxu1 %vm605_vm2, %v813_v61  ;;  %v775_v4 = vmul.f32 %v1856_v49, %v2123_v24  ;;  %v812_v53 = vmul.f32 0.17677669, %v788_v62 }
 0x1a7   : > { %v656_v25 = vpop.xlane.xlu1 %655  ;;  %v1858_v43 = vpop.eup %1857 }
 0x1a8   : > { %1871 = vrsqrt.f32 %v719_v3  ;;  %v718_v41 = vadd.f32 1e-12, %v656_v25  ;;  %1784 = vmatmul.mubr.msk.f32.vlgmr.msra.gmra.mxu1 %vm605_vm2, %v775_v4  ;;  %v786_v12 = vmul.f32 %v1858_v43, %v2129_v27 }
 0x1a9   : > { %v1860_v6 = vpop.eup %1859  ;;  %1796 = vmatpush3.xpose.msk.msra.mxu1 %vm605_vm2, %v813_v61  ;;  %v647_v45 = vpop.xlane.xlu0 %646 }
 0x1aa   : > { %v715_v28 = vadd.f32 1e-12, %v647_v45  ;;  %1797 = vmatprep.subr.msk.mxu1 %vm605_vm2, %v812_v53  ;;  %v787_v8 = vmul.f32 %v1860_v6, %v2137_v30  ;;  %1873 = vrsqrt.f32 %v718_v41  ;;  %v810_v30 = vmul.f32 0.17677669, %v786_v12 }
 0x1ab   : > { %v653_v10 = vpop.xlane.xlu1 %652 }
 0x1ac   : > { %1875 = vrsqrt.f32 %v715_v28  ;;  %v717_v24 = vadd.f32 1e-12, %v653_v10  ;;  %v811_v11 = vmul.f32 0.17677669, %v787_v8 }
 0x1ad   : > { %v1862_v56 = vpop.eup %1861  ;;  %1798 = vmatpush3.xpose.msk.msra.mxu1 %vm605_vm2, %v812_v53  ;;  %v650_v7 = vpop.xlane.xlu0 %649 }
 0x1ae   : > { %v716_v2 = vadd.f32 1e-12, %v650_v7  ;;  %1799 = vmatprep.subr.msk.mxu1 %vm605_vm2, %v811_v11  ;;  %v1864_v17 = vpop.eup %1863  ;;  %1877 = vrsqrt.f32 %v717_v24  ;;  %v785_v16 = vmul.f32 %v1862_v56, %v2151_v38 }
 0x1af   : > { %v683_v13 = vpop.xlane.xlu1 %682  ;;  %v1866_v19 = vpop.eup %1865  ;;  %v784_v63 = vmul.f32 %v1864_v17, %v2145_v34 }
 0x1b0   : > { %1879 = vrsqrt.f32 %v716_v2  ;;  %v727_v27 = vadd.f32 1e-12, %v683_v13  ;;  %v777_v32 = vmul.f32 %v1866_v19, %v2157_v42  ;;  %v809_v38 = vmul.f32 0.17677669, %v785_v16 }
 0x1b1   : > { %v1868_v48 = vpop.eup %1867  ;;  %1800 = vmatpush3.xpose.msk.msra.mxu1 %vm605_vm2, %v811_v11  ;;  %v680_v20 = vpop.xlane.xlu0 %679  ;;  %v808_v42 = vmul.f32 0.17677669, %v784_v63 }
 0x1b2   : > { %v726_v22 = vadd.f32 1e-12, %v680_v20  ;;  %1801 = vmatprep.subr.msk.mxu1 %vm605_vm2, %v810_v30  ;;  %v776_v23 = vmul.f32 %v1868_v48, %v2163_v50 }
 0x1b3   : > { %v1870_v26 = vpop.eup %1869  ;;  %v689_v31 = vpop.xlane.xlu1 %688 }
 0x1b4   : > { %1881 = vrsqrt.f32 %v726_v22  ;;  %1786 = vmatprep.mubr.msk.f32.mxu1 %vm605_vm2, %v776_v23  ;;  %v778_v33 = vmul.f32 %v1870_v26, %v2169_v54  ;;  %v729_v39 = vadd.f32 1e-12, %v689_v31 }
 0x1b5   : > { %v1872_v35 = vpop.eup %1871  ;;  %1802 = vmatpush3.xpose.msk.msra.mxu1 %vm605_vm2, %v810_v30  ;;  %v686_v37 = vpop.xlane.xlu0 %685  ;;  %1883 = vrsqrt.f32 %v727_v27 }
 0x1b6   : > { %v728_v44 = vadd.f32 1e-12, %v686_v37  ;;  %1787 = vmatmul.mubr.msk.f32.gmra.mxu1 %vm605_vm2, %v777_v32  ;;  %1803 = vmatprep.subr.msk.mxu1 %vm605_vm2, %v809_v38  ;;  %v783_v55 = vmul.f32 %v1872_v35, %v2175_v60 }
 0x1b7   : > { %1789 = vmatprep.mubr.msk.f32.mxu1 %vm605_vm2, %v778_v33  ;;  %v695_v34 = vpop.xlane.xlu1 %694  ;;  %v1874_v50 = vpop.eup %1873 }
 0x1b8   : > { %1885 = vrsqrt.f32 %v728_v44  ;;  %v731_v47 = vadd.f32 1e-12, %v695_v34  ;;  %v807_v62 = vmul.f32 0.17677669, %v783_v55  ;;  %v782_v49 = vmul.f32 %v1874_v50, %v2181_v0 }
 0x1b9   : > { %v1876_v54 = vpop.eup %1875  ;;  %1804 = vmatpush3.xpose.msk.msra.mxu1 %vm605_vm2, %v809_v38  ;;  %v692_v46 = vpop.xlane.xlu0 %691  ;;  %1887 = vrsqrt.f32 %v729_v39 }
 0x1ba   : > { %v730_v52 = vadd.f32 1e-12, %v692_v46  ;;  %1805 = vmatprep.subr.msk.mxu1 %vm605_vm2, %v808_v42  ;;  %v779_v57 = vmul.f32 %v1876_v54, %v2188_v5  ;;  %v806_v25 = vmul.f32 0.17677669, %v782_v49 }
 0x1bb   : > { %v701_v59 = vpop.xlane.xlu1 %700  ;;  %v1878_v61 = vpop.eup %1877 }
 0x1bc   : > { %1889 = vrsqrt.f32 %v730_v52  ;;  %1790 = vmatmul.mubr.msk.f32.gmra.mxu1 %vm605_vm2, %v779_v57  ;;  %v733_v3 = vadd.f32 1e-12, %v701_v59  ;;  %v781_v5 = vmul.f32 %v1878_v61, %v2194_v9 }
 0x1bd   : > { %v1880_v60 = vpop.eup %1879  ;;  %1806 = vmatpush3.xpose.msk.msra.mxu1 %vm605_vm2, %v808_v42  ;;  %v698_v1 = vpop.xlane.xlu0 %697  ;;  %1891 = vrsqrt.f32 %v731_v47 }
 0x1be   : > { %v732_v4 = vadd.f32 1e-12, %v698_v1  ;;  %1807 = vmatprep.subr.msk.mxu1 %vm605_vm2, %v807_v62  ;;  %v780_v53 = vmul.f32 %v1880_v60, %v2200_v14 }
 0x1c0   : > { %1893 = vrsqrt.f32 %v732_v4  ;;  %1792 = vmatprep.mubr.msk.f32.mxu1 %vm605_vm2, %v780_v53 }
 0x1c1   : > { %v1882_v43 = vpop.eup %1881  ;;  %1808 = vmatpush3.xpose.msk.msra.mxu1 %vm605_vm2, %v807_v62  ;;  %1895 = vrsqrt.f32 %v733_v3 }
 0x1c2   : > { %1793 = vmatmul.mubr.msk.f32.gmra.mxu1 %vm605_vm2, %v781_v5  ;;  %1809 = vmatprep.subr.msk.mxu1 %vm605_vm2, %v806_v25  ;;  %v790_v0 = vmul.f32 %v1882_v43, %v2210_v18  ;;  %v1884_v41 = vpop.eup %1883 }
 0x1c3   : > { %v791_v6 = vmul.f32 %v1884_v41, %v2204_v15 }
 0x1c4   : > { %1811 = vmatprep.mubr.msk.f32.mxu1 %vm605_vm2, %v790_v0 }
 0x1c5   : > { %v1886_v14 = vpop.eup %1885  ;;  %1810 = vmatpush3.xpose.msk.msra.mxu1 %vm605_vm2, %v806_v25 }
 0x1c6   : > { %v792_v9 = vmul.f32 %v1886_v14, %v2224_v29  ;;  %v1888_v45 = vpop.eup %1887 }
 0x1c7   : > { %v793_v8 = vmul.f32 %v1888_v45, %v2216_v21 }
 0x1c8   : > { %1812 = vmatmul.mubr.msk.f32.vlgmr.msra.gmra.mxu1 %vm605_vm2, %v791_v6 }
 0x1c9   : > { %v1890_v28 = vpop.eup %1889  ;;  %1814 = vmatprep.mubr.msk.f32.mxu1 %vm605_vm2, %v792_v9 }
 0x1ca   : > { %v794_v18 = vmul.f32 %v1890_v28, %v2237_v40  ;;  %v1892_v10 = vpop.eup %1891 }
 0x1cb   : > { %v795_v15 = vmul.f32 %v1892_v10, %v2231_v36 }
 0x1cc   : > { %1815 = vmatmul.mubr.msk.f32.gmra.mxu1 %vm605_vm2, %v793_v8 }
 0x1cd   : > { %v1894_v24 = vpop.eup %1893  ;;  %1817 = vmatprep.mubr.msk.f32.mxu1 %vm605_vm2, %v794_v18 }
 0x1ce   : > { %v796_v29 = vmul.f32 %v1894_v24, %v2249_v58  ;;  %v1896_v11 = vpop.eup %1895  ;;  %v1200_v24 = vlaneseq }
 0x1cf   : > { %v797_v12 = vmul.f32 %v1896_v11, %v2243_v51 }
 0x1d0   : > { %1818 = vmatmul.mubr.msk.f32.gmra.mxu1 %vm605_vm2, %v795_v15  ;;  %v2342_v11 = vand.u32 127, %v1200_v24 }
 0x1d1   : > { %1820 = vmatprep.mubr.msk.f32.mxu1 %vm605_vm2, %v796_v29 }
 0x1d2   : > { %vm2718_vm4 = vcmp.ge.s32.totalorder %v2342_v11, 64 }
 0x1d4   : > { %1821 = vmatmul.mubr.msk.f32.gmra.mxu1 %vm605_vm2, %v797_v12 }
 0x268   : > { %v1785_v21 = vpop.f32.mrf.mxu1 }
 0x26a   : > { %v928_v40 = vpop.f32.mrf.mxu1 }
 0x276   : > { %v1788_v56 = vpop.f32.mrf.mxu1 }
 0x278   : > { %v938_v7 = vpop.f32.mrf.mxu1 }
 0x27c   : > { %v1791_v2 = vpop.f32.mrf.mxu1 }
 0x27e   : > { %v948_v17 = vpop.f32.mrf.mxu1 }
 0x282   : > { %v1794_v13 = vpop.f32.mrf.mxu1 }
 0x284   : > { %v958_v19 = vpop.f32.mrf.mxu1 }
 0x288   : > { %v1813_v36 = vpop.f32.mrf.mxu1 }
 0x289   : > { %1130 = vrot.lane.b32.xlu1 %v1813_v36, %s1939_s7 }
 0x28a   : > { %v1081_v58 = vpop.f32.mrf.mxu1 }
 0x28b   : > { %1128 = vrot.lane.b32.xlu0 %v1081_v58, %s1939_s7 }
 0x28c   : > { %v1816_v30 = vpop.f32.mrf.mxu1 }
 0x28d   : > { %1134 = vrot.lane.b32.xlu1 %v1816_v30, %s1939_s7 }
 0x28e   : > { %v1091_v16 = vpop.f32.mrf.mxu1 }
 0x290   : > { %v1819_v48 = vpop.f32.mrf.mxu1 }
 0x291   : > { %1132 = vrot.lane.b32.xlu1 %v1091_v16, %s1939_s7 }
 0x292   : > { %v1101_v51 = vpop.f32.mrf.mxu1 }
 0x293   : > { %1136 = vrot.lane.b32.xlu0 %v1101_v51, %s1939_s7 }
 0x294   : > { %v1822_v20 = vpop.f32.mrf.mxu1 }
 0x295   : > { %1138 = vrot.lane.b32.xlu1 %v1819_v48, %s1939_s7 }
 0x296   : > { %v1111_v27 = vpop.f32.mrf.mxu1 }
 0x297   : > { %1140 = vrot.lane.b32.xlu0 %v1111_v27, %s1939_s7 }
 0x299   : > { %1142 = vrot.lane.b32.xlu1 %v1822_v20, %s1939_s7 }
 0x2fb   : > { %v1131_v22 = vpop.permute.xlu1 %1130 }
 0x2fc   : > { %v1154_v35 = vsel %vm1152_vm3, %v1785_v21, %v1131_v22 }
 0x2fd   : > { %v1129_v26 = vpop.permute.xlu0 %1128 }
 0x2fe   : > { %v1153_v50 = vsel %vm1152_vm3, %v928_v40, %v1129_v26 }
 0x2ff   : > { %v1135_v23 = vpop.permute.xlu1 %1134 }
 0x300   : > { %v1156_v42 = vsel %vm1152_vm3, %v1788_v56, %v1135_v23 }
 0x303   : > { %v1133_v31 = vpop.permute.xlu1 %1132 }
 0x304   : > { %v1155_v55 = vsel %vm1152_vm3, %v938_v7, %v1133_v31 }
 0x305   : > { %v1137_v63 = vpop.permute.xlu0 %1136 }
 0x306   : > { %v1157_v37 = vsel %vm1152_vm3, %v948_v17, %v1137_v63 }
 0x307   : > { %v1139_v32 = vpop.permute.xlu1 %1138  ;;  %v1161_v46 = vmax.f32 %v1153_v50, %v1157_v37 }
 0x308   : > { %v1158_v38 = vsel %vm1152_vm3, %v1791_v2, %v1139_v32 }
 0x309   : > { %v1141_v33 = vpop.permute.xlu0 %1140  ;;  %v1162_v44 = vmax.f32 %v1154_v35, %v1158_v38 }
 0x30a   : > { %v1159_v39 = vsel %vm1152_vm3, %v958_v19, %v1141_v33 }
 0x30b   : > { %v1143_v34 = vpop.permute.xlu1 %1142  ;;  %v1163_v47 = vmax.f32 %v1155_v55, %v1159_v39  ;;  %v1165_v57 = vmax.f32 %v1161_v46, %v1162_v44 }
 0x30c   : > { %v1160_v54 = vsel %vm1152_vm3, %v1794_v13, %v1143_v34 }
 0x30d   : > { %v1164_v52 = vmax.f32 %v1156_v42, %v1160_v54 }
 0x30f   : > { %v1166_v59 = vmax.f32 %v1163_v47, %v1164_v52 }
 0x311   : > { %v1167_v61 = vmax.f32 %v1165_v57, %v1166_v59 }
 0x313   : > { %v1168_v62 = vrot.slane %v1167_v61, 4 }
 0x315   : > { %v1169_v49 = vmax.f32 %v1167_v61, %v1168_v62 }
 0x317   : > { %v1170_v60 = vrot.slane %v1169_v49, 2 }
 0x319   : > { %v1171_v1 = vmax.f32 %v1169_v49, %v1170_v60 }
 0x31b   : > { %v1172_v3 = vrot.slane %v1171_v1, 1 }
 0x31d   : > { %v1173_v4 = vmax.f32 %v1171_v1, %v1172_v3 }
 0x31f   : > { %1174 = vmax.xlane.f32.xlu0 %v1173_v4 }
 0x3a8   : > { %v1175_v53 = vpop.xlane.xlu0 %1174 }
 0x3a9   : > { %v1176_v5 = vsub.f32 %v1153_v50, %v1175_v53  ;;  %v1177_v25 = vsub.f32 %v1154_v35, %v1175_v53  ;;  %v1178_v43 = vsub.f32 %v1155_v55, %v1175_v53  ;;  %v1180_v0 = vsub.f32 %v1157_v37, %v1175_v53 }
 0x3aa   : > { %v1182_v41 = vsub.f32 %v1159_v39, %v1175_v53  ;;  %v1179_v9 = vsub.f32 %v1156_v42, %v1175_v53  ;;  %v1181_v18 = vsub.f32 %v1158_v38, %v1175_v53  ;;  %v1183_v15 = vsub.f32 %v1160_v54, %v1175_v53 }
 0x3ab   : > { %v1184_v14 = vmul.f32 1.442695, %v1176_v5  ;;  %v1186_v6 = vmul.f32 1.442695, %v1177_v25  ;;  %v1188_v45 = vmul.f32 1.442695, %v1178_v43 }
 0x3ac   : > { %v1192_v28 = vmul.f32 1.442695, %v1180_v0  ;;  %v1196_v8 = vmul.f32 1.442695, %v1182_v41  ;;  %v1190_v10 = vmul.f32 1.442695, %v1179_v9 }
 0x3ad   : > { %1897 = vpow2.f32 %v1184_v14  ;;  %v1194_v29 = vmul.f32 1.442695, %v1181_v18  ;;  %v1198_v12 = vmul.f32 1.442695, %v1183_v15 }
 0x3ae   : > { %1899 = vpow2.f32 %v1186_v6 }
 0x3af   : > { %1901 = vpow2.f32 %v1188_v45 }
 0x3b0   : > { %1903 = vpow2.f32 %v1192_v28 }
 0x3b1   : > { %1905 = vpow2.f32 %v1196_v8 }
 0x3b2   : > { %1907 = vpow2.f32 %v1190_v10 }
 0x3b3   : > { %1909 = vpow2.f32 %v1194_v29 }
 0x3b4   : > { %1911 = vpow2.f32 %v1198_v12 }
 0x3ba   : > { %v2345_v21 = vpop.eup %1897 }
 0x3bb   : > { %v2347_v40 = vpop.eup %1899  ;;  %v1216_v56 = vsel %vm2718_vm4, 0.0, %v2345_v21  ;;  %v1240_v51 = vsel %vm2718_vm4, %v2345_v21, 0.0 }
 0x3bc   : > { %v1217_v7 = vsel %vm2718_vm4, 0.0, %v2347_v40  ;;  %1224 = vadd.xlane.f32.xlu1 %v1216_v56  ;;  %v2355_v2 = vpop.eup %1901  ;;  %v1241_v31 = vsel %vm2718_vm4, %v2347_v40, 0.0  ;;  %v1203_v35 = vadd.f32 %v2347_v40, %v2345_v21 }
 0x3bd   : > { %1226 = vadd.xlane.f32.xlu0 %v1217_v7  ;;  %v2357_v17 = vpop.eup %1903  ;;  %v1218_v36 = vsel %vm2718_vm4, 0.0, %v2355_v2  ;;  %v1242_v22 = vsel %vm2718_vm4, %v2355_v2, 0.0 }
 0x3be   : > { %v1220_v13 = vsel %vm2718_vm4, 0.0, %v2357_v17  ;;  %v2362_v19 = vpop.eup %1905  ;;  %v1244_v26 = vsel %vm2718_vm4, %v2357_v17, 0.0  ;;  %v1204_v37 = vadd.f32 %v2355_v2, %v1203_v35 }
 0x3bf   : > { %v2367_v58 = vpop.eup %1907  ;;  %v1222_v30 = vsel %vm2718_vm4, 0.0, %v2362_v19  ;;  %v1246_v63 = vsel %vm2718_vm4, %v2362_v19, 0.0 }
 0x3c0   : > { %1232 = vadd.xlane.f32.xlu1 %v1220_v13  ;;  %v1219_v16 = vsel %vm2718_vm4, 0.0, %v2367_v58  ;;  %v2375_v48 = vpop.eup %1909  ;;  %v1243_v32 = vsel %vm2718_vm4, %v2367_v58, 0.0  ;;  %v1205_v39 = vadd.f32 %v2367_v58, %v1204_v37 }
 0x3c1   : > { %1228 = vadd.xlane.f32.xlu0 %v1218_v36  ;;  %v1221_v20 = vsel %vm2718_vm4, 0.0, %v2375_v48  ;;  %v2383_v27 = vpop.eup %1911  ;;  %v1245_v38 = vsel %vm2718_vm4, %v2375_v48, 0.0 }
 0x3c2   : > { %v1223_v23 = vsel %vm2718_vm4, 0.0, %v2383_v27  ;;  %v1247_v33 = vsel %vm2718_vm4, %v2383_v27, 0.0  ;;  %v1206_v44 = vadd.f32 %v2357_v17, %v1205_v39 }
 0x3c4   : > { %1236 = vadd.xlane.f32.xlu1 %v1222_v30  ;;  %v1207_v34 = vadd.f32 %v2375_v48, %v1206_v44 }
 0x3c5   : > { %1230 = vadd.xlane.f32.xlu0 %v1219_v16 }
 0x3c6   : > { %v1208_v50 = vadd.f32 %v2362_v19, %v1207_v34 }
 0x3c8   : > { %1248 = vadd.xlane.f32.xlu1 %v1240_v51  ;;  %v1209_v42 = vadd.f32 %v2383_v27, %v1208_v50 }
 0x3c9   : > { %1234 = vadd.xlane.f32.xlu0 %v1221_v20 }
 0x3ca   : > { %v1210_v55 = vrot.slane %v1209_v42, 4 }
 0x3cc   : > { %1252 = vadd.xlane.f32.xlu1 %v1242_v22  ;;  %v1211_v54 = vadd.f32 %v1210_v55, %v1209_v42 }
 0x3cd   : > { %1238 = vadd.xlane.f32.xlu0 %v1223_v23 }
 0x3ce   : > { %v1212_v46 = vrot.slane %v1211_v54, 2 }
 0x3d0   : > { %1256 = vadd.xlane.f32.xlu1 %v1244_v26  ;;  %v1213_v47 = vadd.f32 %v1212_v46, %v1211_v54 }
 0x3d1   : > { %1250 = vadd.xlane.f32.xlu0 %v1241_v31 }
 0x3d2   : > { %v1214_v59 = vrot.slane %v1213_v47, 1 }
 0x3d4   : > { %1260 = vadd.xlane.f32.xlu1 %v1246_v63  ;;  %v1215_v49 = vadd.f32 %v1214_v59, %v1213_v47 }
 0x3d5   : > { %1254 = vadd.xlane.f32.xlu0 %v1243_v32 }
 0x3d6   : > { %1913 = vrcp.f32 %v1215_v49 }
 0x3d9   : > { %1258 = vadd.xlane.f32.xlu0 %v1245_v38 }
 0x3dd   : > { %1262 = vadd.xlane.f32.xlu0 %v1247_v33 }
 0x3e3   : > { %v1914_v45 = vpop.eup %1913 }
 0x3e4   : > { %v1273_v15 = vmul.f32 %v1914_v45, %v2345_v21  ;;  %v1275_v36 = vmul.f32 %v1914_v45, %v2355_v2  ;;  %v1277_v26 = vmul.f32 %v1914_v45, %v2357_v17  ;;  %v1274_v32 = vmul.f32 %v1914_v45, %v2347_v40 }
 0x3e5   : > { %v1279_v39 = vmul.f32 %v1914_v45, %v2362_v19  ;;  %v1276_v50 = vmul.f32 %v1914_v45, %v2367_v58  ;;  %v1278_v47 = vmul.f32 %v1914_v45, %v2375_v48 }
 0x445   : > { %v1225_v52 = vpop.xlane.xlu1 %1224 }
 0x446   : > { %v1227_v57 = vpop.xlane.xlu0 %1226 }
 0x449   : > { %v1233_v61 = vpop.xlane.xlu1 %1232 }
 0x44a   : > { %v1229_v62 = vpop.xlane.xlu0 %1228 }
 0x44d   : > { %v1237_v60 = vpop.xlane.xlu1 %1236 }
 0x44e   : > { %v1231_v1 = vpop.xlane.xlu0 %1230 }
 0x451   : > { %v1249_v3 = vpop.xlane.xlu1 %1248 }
 0x452   : > { %v1235_v4 = vpop.xlane.xlu0 %1234  ;;  %v1264_v53 = vsel %vm2718_vm4, %v1249_v3, %v1225_v52 }
 0x453   : > { %1915 = vrcp.f32 %v1264_v53 }
 0x455   : > { %v1253_v5 = vpop.xlane.xlu1 %1252 }
 0x456   : > { %v1239_v25 = vpop.xlane.xlu0 %1238  ;;  %v1266_v43 = vsel %vm2718_vm4, %v1253_v5, %v1229_v62 }
 0x457   : > { %1917 = vrcp.f32 %v1266_v43 }
 0x459   : > { %v1257_v0 = vpop.xlane.xlu1 %1256 }
 0x45a   : > { %v1251_v41 = vpop.xlane.xlu0 %1250  ;;  %v1268_v14 = vsel %vm2718_vm4, %v1257_v0, %v1233_v61  ;;  %v1280_v61 = vmul.f32 %v1914_v45, %v2383_v27 }
 0x45b   : > { %v1265_v6 = vsel %vm2718_vm4, %v1251_v41, %v1227_v57  ;;  %1919 = vrcp.f32 %v1268_v14 }
 0x45c   : > { %1921 = vrcp.f32 %v1265_v6 }
 0x45d   : > { %v1261_v9 = vpop.xlane.xlu1 %1260 }
 0x45e   : > { %v1255_v28 = vpop.xlane.xlu0 %1254  ;;  %v1270_v8 = vsel %vm2718_vm4, %v1261_v9, %v1237_v60 }
 0x45f   : > { %v1267_v18 = vsel %vm2718_vm4, %v1255_v28, %v1231_v1  ;;  %1923 = vrcp.f32 %v1270_v8 }
 0x460   : > { %v1916_v10 = vpop.eup %1915  ;;  %1925 = vrcp.f32 %v1267_v18 }
 0x461   : > { %v1289_v29 = vmul.f32 %v1916_v10, %v2345_v21 }
 0x462   : > { %v1259_v12 = vpop.xlane.xlu0 %1258 }
 0x463   : > { %v1269_v56 = vsel %vm2718_vm4, %v1259_v12, %v1235_v4  ;;  %v2433_v7 = vmul.f32 %v1289_v29, %v1273_v15  ;;  %v2522_v29 = vshrl.u32 %v1200_v24, 7 }
 0x464   : > { %v1918_v13 = vpop.eup %1917  ;;  %1927 = vrcp.f32 %v1269_v56 }
 0x465   : > { %v1291_v30 = vmul.f32 %v1918_v13, %v2355_v2  ;;  %v1318_v16 = vsel %vm2718_vm4, -inf, %v2433_v7  ;;  %v1342_v59 = vsel %vm2718_vm4, %v2433_v7, -inf  ;;  %v2527_v56 = vadd.s32 8, %v2522_v29 }
 0x466   : > { %v1263_v51 = vpop.xlane.xlu0 %1262  ;;  %1326 = vmax.xlane.f32.xlu1 %v1318_v16  ;;  %v2530_v13 = vadd.s32 16, %v2522_v29  ;;  %v2539_v16 = vadd.s32 40, %v2522_v29  ;;  %v2542_v24 = vadd.s32 48, %v2522_v29 }
 0x467   : > { %v1271_v21 = vsel %vm2718_vm4, %v1263_v51, %v1239_v25  ;;  %v2442_v20 = vmul.f32 %v1291_v30, %v1275_v36  ;;  %v2533_v36 = vadd.s32 24, %v2522_v29  ;;  %v2536_v30 = vadd.s32 32, %v2522_v29 }
 0x468   : > { %v1920_v22 = vpop.eup %1919  ;;  %1929 = vrcp.f32 %v1271_v21  ;;  %v2545_v51 = vadd.s32 56, %v2522_v29 }
 0x469   : > { %v1922_v23 = vpop.eup %1921  ;;  %v1293_v31 = vmul.f32 %v1920_v22, %v2357_v17  ;;  %v1320_v2 = vsel %vm2718_vm4, -inf, %v2442_v20  ;;  %v1344_v60 = vsel %vm2718_vm4, %v2442_v20, -inf }
 0x46a   : > { %v1290_v63 = vmul.f32 %v1922_v23, %v2347_v40  ;;  %1330 = vmax.xlane.f32.xlu1 %v1320_v2 }
 0x46b   : > { %v2451_v38 = vmul.f32 %v1293_v31, %v1277_v26 }
 0x46c   : > { %v1924_v33 = vpop.eup %1923  ;;  %v2453_v35 = vmul.f32 %v1290_v63, %v1274_v32 }
 0x46d   : > { %v1926_v37 = vpop.eup %1925  ;;  %v1295_v44 = vmul.f32 %v1924_v33, %v2362_v19  ;;  %v1322_v17 = vsel %vm2718_vm4, -inf, %v2451_v38  ;;  %v1305_v14 = vmax.f32 %v2433_v7, %v2451_v38 }
 0x46e   : > { %v1292_v34 = vmul.f32 %v1926_v37, %v2367_v58  ;;  %v1319_v40 = vsel %vm2718_vm4, -inf, %v2453_v35  ;;  %1334 = vmax.xlane.f32.xlu1 %v1322_v17  ;;  %v1343_v3 = vsel %vm2718_vm4, %v2453_v35, -inf }
 0x46f   : > { %v2465_v42 = vmul.f32 %v1295_v44, %v1279_v39  ;;  %1328 = vmax.xlane.f32.xlu0 %v1319_v40 }
 0x470   : > { %v2467_v55 = vmul.f32 %v1292_v34, %v1276_v50 }
 0x471   : > { %v1928_v54 = vpop.eup %1927  ;;  %v1324_v19 = vsel %vm2718_vm4, -inf, %v2465_v42  ;;  %v1348_v4 = vsel %vm2718_vm4, %v2465_v42, -inf  ;;  %v1307_v41 = vmax.f32 %v2442_v20, %v2465_v42 }
 0x472   : > { %v1294_v46 = vmul.f32 %v1928_v54, %v2375_v48  ;;  %v1321_v58 = vsel %vm2718_vm4, -inf, %v2467_v55  ;;  %1338 = vmax.xlane.f32.xlu1 %v1324_v19  ;;  %v1345_v53 = vsel %vm2718_vm4, %v2467_v55, -inf }
 0x473   : > { %1332 = vmax.xlane.f32.xlu0 %v1321_v58 }
 0x474   : > { %v2477_v52 = vmul.f32 %v1294_v46, %v1278_v47 }
 0x475   : > { %v1930_v57 = vpop.eup %1929 }
 0x476   : > { %v1296_v62 = vmul.f32 %v1930_v57, %v2383_v27  ;;  %v1323_v48 = vsel %vm2718_vm4, -inf, %v2477_v52  ;;  %1350 = vmax.xlane.f32.xlu1 %v1342_v59  ;;  %v1346_v27 = vsel %vm2718_vm4, %v2451_v38, -inf  ;;  %v1347_v5 = vsel %vm2718_vm4, %v2477_v52, -inf }
 0x477   : > { %1336 = vmax.xlane.f32.xlu0 %v1323_v48  ;;  %v1306_v0 = vmax.f32 %v2453_v35, %v2477_v52 }
 0x478   : > { %v2487_v49 = vmul.f32 %v1296_v62, %v1280_v61 }
 0x479   : > { %v1309_v9 = vmax.f32 %v1305_v14, %v1306_v0 }
 0x47a   : > { %v1325_v1 = vsel %vm2718_vm4, -inf, %v2487_v49  ;;  %1354 = vmax.xlane.f32.xlu1 %v1344_v60  ;;  %v1349_v25 = vsel %vm2718_vm4, %v2487_v49, -inf  ;;  %v1308_v43 = vmax.f32 %v2467_v55, %v2487_v49 }
 0x47b   : > { %1340 = vmax.xlane.f32.xlu0 %v1325_v1 }
 0x47c   : > { %v1310_v6 = vmax.f32 %v1307_v41, %v1308_v43 }
 0x47e   : > { %1358 = vmax.xlane.f32.xlu1 %v1346_v27  ;;  %v1311_v45 = vmax.f32 %v1309_v9, %v1310_v6 }
 0x47f   : > { %1352 = vmax.xlane.f32.xlu0 %v1343_v3 }
 0x480   : > { %v1312_v28 = vrot.slane %v1311_v45, 4 }
 0x482   : > { %1362 = vmax.xlane.f32.xlu1 %v1348_v4  ;;  %v1313_v8 = vmax.f32 %v1311_v45, %v1312_v28 }
 0x483   : > { %1356 = vmax.xlane.f32.xlu0 %v1345_v53 }
 0x484   : > { %v1314_v18 = vrot.slane %v1313_v8, 2 }
 0x486   : > { %v1315_v10 = vmax.f32 %v1313_v8, %v1314_v18 }
 0x487   : > { %1360 = vmax.xlane.f32.xlu0 %v1347_v5 }
 0x488   : > { %v1316_v15 = vrot.slane %v1315_v10, 1 }
 0x48a   : > { %v2524_v12 = vmax.f32 %v1315_v10, %v1316_v15 }
 0x48b   : > { %1364 = vmax.xlane.f32.xlu0 %v1349_v25 }
 0x48c   : > { %vm1374_vm5 = vcmp.ge.f32.partialorder %v2433_v7, %v2524_v12  ;;  %vm1375_vm6 = vcmp.ge.f32.partialorder %v2453_v35, %v2524_v12  ;;  %vm1376_vm7 = vcmp.ge.f32.partialorder %v2442_v20, %v2524_v12  ;;  %vm2716_vm8 = vcmp.ge.f32.partialorder %v2467_v55, %v2524_v12 }
 0x48d   : > { %vm2717_vm9 = vcmp.ge.f32.partialorder %v2487_v49, %v2524_v12  ;;  %vm1378_vm10 = vcmp.ge.f32.partialorder %v2451_v38, %v2524_v12  ;;  %vm1379_vm11 = vcmp.ge.f32.partialorder %v2477_v52, %v2524_v12  ;;  %vm1380_vm12 = vcmp.ge.f32.partialorder %v2465_v42, %v2524_v12 }
 0x48e   : > { %v1399_v21 = vsel %vm1374_vm5, %v2522_v29, 64  ;;  %v1400_v22 = vsel %vm1375_vm6, %v2527_v56, 64  ;;  %v1401_v23 = vsel %vm1376_vm7, %v2530_v13, 64  ;;  %v1402_v26 = vsel %vm2716_vm8, %v2533_v36, 64 }
 0x48f   : > { %v1403_v31 = vsel %vm1378_vm10, %v2536_v30, 64  ;;  %v1404_v2 = vsel %vm1379_vm11, %v2539_v16, 64  ;;  %v1405_v63 = vsel %vm1380_vm12, %v2542_v24, 64  ;;  %v1406_v32 = vsel %vm2717_vm9, %v2545_v51, 64 }
 0x490   : > { %vm1407_vm13 = vcmp.lt.s32.totalorder %v1399_v21, %v1403_v31  ;;  %vm1409_vm14 = vcmp.lt.s32.totalorder %v1400_v22, %v1404_v2  ;;  %vm1411_vm15 = vcmp.lt.s32.totalorder %v1401_v23, %v1405_v63  ;;  %vm1413_vm0 = vcmp.lt.s32.totalorder %v1402_v26, %v1406_v32 }
 0x491   : > { %v1408_v33 = vsel %vm1407_vm13, %v1399_v21, %v1403_v31  ;;  %v1410_v37 = vsel %vm1409_vm14, %v1400_v22, %v1404_v2  ;;  %v1412_v39 = vsel %vm1411_vm15, %v1401_v23, %v1405_v63  ;;  %v1414_v44 = vsel %vm1413_vm0, %v1402_v26, %v1406_v32 }
 0x492   : > { %vm1415_vm1 = vcmp.lt.s32.totalorder %v1408_v33, %v1410_v37  ;;  %vm1417_vm2 = vcmp.lt.s32.totalorder %v1412_v39, %v1414_v44 }
 0x493   : > { %v1416_v17 = vsel %vm1415_vm1, %v1408_v33, %v1410_v37  ;;  %v1418_v34 = vsel %vm1417_vm2, %v1412_v39, %v1414_v44 }
 0x494   : > { %vm1419_vm3 = vcmp.lt.s32.totalorder %v1416_v17, %v1418_v34 }
 0x495   : > { %v1420_v50 = vsel %vm1419_vm3, %v1416_v17, %v1418_v34 }
 0x496   : > { %v1421_v40 = vrot.slane %v1420_v50, 4 }
 0x498   : > { %vm1422_vm8 = vcmp.lt.s32.totalorder %v1420_v50, %v1421_v40 }
 0x499   : > { %v1423_v54 = vsel %vm1422_vm8, %v1420_v50, %v1421_v40 }
 0x49a   : > { %v1424_v46 = vrot.slane %v1423_v54, 2 }
 0x49c   : > { %vm1425_vm9 = vcmp.lt.s32.totalorder %v1423_v54, %v1424_v46 }
 0x49d   : > { %v1426_v59 = vsel %vm1425_vm9, %v1423_v54, %v1424_v46 }
 0x49e   : > { %v1427_v62 = vrot.slane %v1426_v59, 1 }
 0x4a0   : > { %vm1428_vm13 = vcmp.lt.s32.totalorder %v1426_v59, %v1427_v62 }
 0x4a1   : > { %v2595_v27 = vsel %vm1428_vm13, %v1426_v59, %v1427_v62 }
 0x4a2   : > { %vm1430_vm8 = vcmp.eq.s32.totalorder %v2522_v29, %v2595_v27  ;;  %vm1432_vm14 = vcmp.eq.s32.totalorder %v2530_v13, %v2595_v27  ;;  %vm1431_vm15 = vcmp.eq.s32.totalorder %v2527_v56, %v2595_v27  ;;  %vm1434_vm0 = vcmp.eq.s32.totalorder %v2536_v30, %v2595_v27 }
 0x4a3   : > { %vm2608_vm9 = vmand %vm1374_vm5, %vm1430_vm8  ;;  %vm1436_vm5 = vcmp.eq.s32.totalorder %v2542_v24, %v2595_v27 }
 0x4a4   : > { %vm2617_vm1 = vmand %vm1376_vm7, %vm1432_vm14  ;;  %vm1435_vm7 = vcmp.eq.s32.totalorder %v2539_v16, %v2595_v27 }
 0x4a5   : > { %vm2630_vm2 = vmand %vm1375_vm6, %vm1431_vm15 }
 0x4a6   : > { %vm1442_vm13 = vmand %vm1378_vm10, %vm1434_vm0 }
 0x4a7   : > { %vm1444_vm6 = vmand %vm1380_vm12, %vm1436_vm5  ;;  %vm2729_vm5 = vcmp.ge.s32.totalorder %v2342_v11, 64 }
 0x4a8   : > { %vm2652_vm10 = vmand %vm1379_vm11, %vm1435_vm7  ;;  %vm1433_vm7 = vcmp.eq.s32.totalorder %v2533_v36, %v2595_v27 }
 0x4ef   : > { %v1327_v19 = vpop.xlane.xlu1 %1326 }
 0x4f3   : > { %v1331_v47 = vpop.xlane.xlu1 %1330 }
 0x4f7   : > { %v1335_v58 = vpop.xlane.xlu1 %1334 }
 0x4f8   : > { %v1329_v57 = vpop.xlane.xlu0 %1328 }
 0x4fb   : > { %v1339_v61 = vpop.xlane.xlu1 %1338 }
 0x4fc   : > { %v1333_v48 = vpop.xlane.xlu0 %1332 }
 0x4ff   : > { %v1351_v60 = vpop.xlane.xlu1 %1350 }
 0x500   : > { %v1337_v1 = vpop.xlane.xlu0 %1336  ;;  %v1366_v5 = vsel %vm2718_vm4, %v1351_v60, %v1327_v19 }
 0x501   : > { %vm1382_vm3 = vcmp.ge.f32.partialorder %v2433_v7, %v1366_v5  ;;  %v2725_v7 = vmov 0 }
 0x502   : > { %v2726_v7 = vsel %vm2652_vm10, 4294967295, %v2725_v7  ;;  %vm2658_vm15 = vmand %vm2608_vm9, %vm1382_vm3 }
 0x503   : > { %v1355_v3 = vpop.xlane.xlu1 %1354  ;;  %vm2730_vm9 = vmmov %vm2729_vm5 }
 0x504   : > { %v1341_v4 = vpop.xlane.xlu0 %1340  ;;  %v1368_v45 = vsel %vm2718_vm4, %v1355_v3, %v1331_v47 }
 0x507   : > { %v1359_v53 = vpop.xlane.xlu1 %1358 }
 0x508   : > { %v1353_v43 = vpop.xlane.xlu0 %1352  ;;  %v1370_v41 = vsel %vm2718_vm4, %v1359_v53, %v1335_v58 }
 0x509   : > { %v1367_v14 = vsel %vm2718_vm4, %v1353_v43, %v1329_v57  ;;  %vm1386_vm8 = vcmp.ge.f32.partialorder %v2451_v38, %v1370_v41 }
 0x50a   : > { %vm1383_vm14 = vcmp.ge.f32.partialorder %v2453_v35, %v1367_v14  ;;  %vm1450_vm12 = vmand %vm1442_vm13, %vm1386_vm8  ;;  %vm2733_vm8 = vnez %v2726_v7 }
 0x50b   : > { %v1363_v9 = vpop.xlane.xlu1 %1362  ;;  %vm1447_vm11 = vmand %vm2630_vm2, %vm1383_vm14 }
 0x50c   : > { %v1357_v28 = vpop.xlane.xlu0 %1356  ;;  %v1372_v8 = vsel %vm2718_vm4, %v1363_v9, %v1339_v61  ;;  %vm1384_vm4 = vcmp.ge.f32.partialorder %v2442_v20, %v1368_v45  ;;  %v1940_v20 = vmov 0  }
 0x50d   : > { %vm1388_vm0 = vcmp.ge.f32.partialorder %v2465_v42, %v1372_v8  ;;  %v1369_v35 = vsel %vm2729_vm5, %v1357_v28, %v1333_v48  ;;  %vm2674_vm3 = vmand %vm2617_vm1, %vm1384_vm4  ;;  %v1458_v15 = vsel %vm1450_vm12, 1, %v1940_v20  ;;  %v1454_v29 = vsel %vm2658_vm15, 1, %v1940_v20 }
 0x50e   : > { %vm1452_vm10 = vmand %vm1444_vm6, %vm1388_vm0  ;;  %vm1385_vm13 = vcmp.ge.f32.partialorder %v2467_v55, %v1369_v35  ;;  %vm1437_vm6 = vcmp.eq.s32.totalorder %v2545_v51, %v2595_v27  ;;  %v1455_v56 = vsel %vm1447_vm11, 1, %v1940_v20  ;;  %vm2734_vm4 = vcmp.ge.f32.partialorder %v2467_v55, %v2524_v12 }
 0x50f   : > { %vm1441_vm1 = vmand %vm2734_vm4, %vm1433_vm7  ;;  %v1460_v13 = vsel %vm1452_vm10, 1, %v1940_v20  ;;  %vm1462_vm0 = vcmp.gt.s32.totalorder %v1454_v29, %v1458_v15  ;;  %v1456_v16 = vsel %vm2674_vm3, 1, %v1940_v20  ;;  %vm2735_vm11 = vcmp.ge.f32.partialorder %v2487_v49, %v2524_v12 }
 0x510   : > { %v1361_v18 = vpop.xlane.xlu0 %1360  ;;  %vm1449_vm12 = vmand %vm1441_vm1, %vm1385_vm13  ;;  %vm1466_vm7 = vcmp.gt.s32.totalorder %v1456_v16, %v1460_v13  ;;  %v1463_v55 = vsel %vm1462_vm0, %v1454_v29, %v1458_v15 }
 0x511   : > { %v1371_v10 = vsel %vm2730_vm9, %v1361_v18, %v1337_v1  ;;  %v1457_v51 = vsel %vm1449_vm12, 1, %v1940_v20  ;;  %v1467_v22 = vsel %vm1466_vm7, %v1456_v16, %v1460_v13  ;;  %vm1486_vm12 = vcmp.gt.f32.partialorder %v2524_v12, 0.0 }
 0x512   : > { %vm1387_vm2 = vcmp.ge.f32.partialorder %v2477_v52, %v1371_v10 }
 0x513   : > { %vm1451_vm14 = vmand %vm2733_vm8, %vm1387_vm2 }
 0x514   : > { %v1459_v36 = vsel %vm1451_vm14, 1, %v1940_v20  ;;  %v1365_v30 = vpop.xlane.xlu0 %1364  ;;  %vm1445_vm2 = vmand %vm2735_vm11, %vm1437_vm6 }
 0x515   : > { %vm1464_vm5 = vcmp.gt.s32.totalorder %v1455_v56, %v1459_v36  ;;  %v1373_v52 = vsel %vm2730_vm9, %v1365_v30, %v1341_v4 }
 0x516   : > { %v1465_v24 = vsel %vm1464_vm5, %v1455_v56, %v1459_v36  ;;  %vm1389_vm15 = vcmp.ge.f32.partialorder %v2487_v49, %v1373_v52 }
 0x517   : > { %vm1453_vm10 = vmand %vm1445_vm2, %vm1389_vm15  ;;  %vm1470_vm13 = vcmp.gt.s32.totalorder %v1463_v55, %v1465_v24 }
 0x518   : > { %v1461_v21 = vsel %vm1453_vm10, 1, %v1940_v20  ;;  %v1471_v23 = vsel %vm1470_vm13, %v1463_v55, %v1465_v24 }
 0x519   : > { %vm1468_vm8 = vcmp.gt.s32.totalorder %v1457_v51, %v1461_v21 }
 0x51a   : > { %v1469_v11 = vsel %vm1468_vm8, %v1457_v51, %v1461_v21 }
 0x51b   : > { %vm1472_vm14 = vcmp.gt.s32.totalorder %v1467_v22, %v1469_v11 }
 0x51c   : > { %v1473_v26 = vsel %vm1472_vm14, %v1467_v22, %v1469_v11 }
 0x51d   : > { %vm1474_vm3 = vcmp.gt.s32.totalorder %v1471_v23, %v1473_v26 }
 0x51e   : > { %v1475_v31 = vsel %vm1474_vm3, %v1471_v23, %v1473_v26 }
 0x51f   : > { %v1476_v2 = vrot.slane %v1475_v31, 4 }
 0x521   : > { %vm1477_vm4 = vcmp.gt.s32.totalorder %v1475_v31, %v1476_v2 }
 0x522   : > { %v1478_v49 = vsel %vm1477_vm4, %v1475_v31, %v1476_v2 }
 0x523   : > { %v1479_v63 = vrot.slane %v1478_v49, 2 }
 0x525   : > { %vm1480_vm6 = vcmp.gt.s32.totalorder %v1478_v49, %v1479_v63 }
 0x526   : > { %v1481_v32 = vsel %vm1480_vm6, %v1478_v49, %v1479_v63 }
 0x527   : > { %v1482_v33 = vrot.slane %v1481_v32, 1 }
 0x529   : > { %vm1483_vm1 = vcmp.gt.s32.totalorder %v1481_v32, %v1482_v33 }
 0x52a   : > { %v1484_v37 = vsel %vm1483_vm1, %v1481_v32, %v1482_v33 }
 0x52b   : > { %vm1485_vm0 = vcmp.gt.s32.totalorder %v1484_v37, 0 }
 0x52c   : > { %vm1487_vm5 = vmand %vm1485_vm0, %vm1486_vm12 }
 0x52d   : > { %v1488_v39 = vsel %vm1487_vm5, %v2595_v27, 4294967295  ;;  %v1490_v44 = vsel %vm1487_vm5, %v2524_v12, 0.0 }
 0x52e   : > { %1489 = vst [vmem:[%s199_s10] sm:$0x1] %v1488_v39  ;;  %1491 = vst [vmem:[%s202_s13] sm:$0x1] %v1490_v44 }
 0x52f PF: > { %s15_s15 = sadd.s32 1, %s1937_s15  }
 0x530   : > { %p12_p4 = scmp.ge.s32.totalorder %s15_s15, 4  }
 0x532   :  { %14 = sbr.rel (!%p12_p4) target bundleno = 1 (0x1), region = 74 }

</bundles_post_ra>
